<compile_context>
chip_gen: v7x
topology: tpu7x:2x2x1
jax: 0.10.0
libtpu: 0.0.40
codegen_flags: <defaults>
</compile_context>

<pallas_src>
import functools

import jax
import jax.numpy as jnp
from jax import lax
from jax.experimental import pallas as pl
from jax.experimental.pallas import tpu as pltpu


def lstm_kernel(x_ref, w_ih_ref, w_hh_ref, b_ref, w_lin_ref, b_lin_ref,
                out_ref, *, seq_len, batch_pad, hidden_pad, forecast_steps,
                scalar_input):
    """Single-invocation LSTM: the serial recurrence lives entirely in-kernel.

    x_ref    : (T*Bp, I)    time-major, batch-padded, flattened input (I unpadded)
    w_ih_ref : (I, 4Hp)     per-gate zero-padded
    w_hh_ref : (Hp, 4Hp)    per-gate zero-padded (matmul dtype, f32 default)
    b_ref    : (1, 4Hp)     fused b_ih + b_hh, per-gate zero-padded
    w_lin_ref: (Hp, Op)
    b_lin_ref: (1, Op)
    out_ref  : (F*Bp, Op)   linear head applied only to the last F timesteps
    """
    T, Bp, Hp, F = seq_len, batch_pad, hidden_pad, forecast_steps
    half = jnp.float32(0.5)

    # Small loop-invariant operands hoisted once (1 sublane x 4Hp lanes each).
    w_ih_v = w_ih_ref[...]            # (I, 4Hp)
    b_v = b_ref[...]                  # (1, 4Hp)

    # Zero-init hidden / cell state (PyTorch default when no (h0, c0) is given).
    h = jnp.zeros((Bp, Hp), jnp.float32)
    c = jnp.zeros((Bp, Hp), jnp.float32)

    def sigmoid(x):
        # sigma(x) = 0.5 * tanh(0.5 x) + 0.5 : one EUP push instead of exp+recip.
        return half * jnp.tanh(half * x) + half

    tail = []
    # Fully unrolled serial recurrence (T is small and static).  Per step, only
    # the (Bp,Hp)@(Hp,4Hp) recurrent matmul + gate math is on the critical path;
    # the input contribution is a VPU broadcast-multiply when input_size == 1.
    for t in range(T):
        x_t = x_ref[pl.ds(t * Bp, Bp), :]                     # (Bp, I)
        if scalar_input:
            gin = x_t * w_ih_v                                # (Bp,1)*(1,4Hp)
        else:
            gin = jnp.dot(x_t, w_ih_v, preferred_element_type=jnp.float32)
        gates = gin + b_v + jnp.dot(
            h.astype(w_hh_ref.dtype), w_hh_ref[...],
            preferred_element_type=jnp.float32)               # (Bp, 4Hp)
        # Each gate block is exactly Hp (a multiple of 128) lanes wide, so the
        # slices below never cut inside a vreg.
        i_g = sigmoid(gates[:, 0 * Hp:1 * Hp])
        f_g = sigmoid(gates[:, 1 * Hp:2 * Hp])
        g_g = jnp.tanh(gates[:, 2 * Hp:3 * Hp])
        o_g = sigmoid(gates[:, 3 * Hp:4 * Hp])
        c = f_g * c + i_g * g_g
        h = o_g * jnp.tanh(c)
        if t >= T - F:            # only keep what the module's tail slice uses
            tail.append(h)

    h_tail = tail[0] if F == 1 else jnp.concatenate(tail, axis=0)  # (F*Bp, Hp)

    # Linear head: one matmul over the forecast tail, lane-dense full store.
    out_ref[...] = (
        jnp.dot(h_tail.astype(w_lin_ref.dtype), w_lin_ref[...],
                preferred_element_type=jnp.float32)
        + b_lin_ref[...]
    )


def _round_up(n, m):
    return ((n + m - 1) // m) * m


def _pad_gate_axis(w, h, hp):
    """(..., 4h) -> (..., 4hp): zero-pad each PyTorch gate block (i,f,g,o) to hp."""
    if hp == h:
        return w
    pad = [(0, 0)] * (w.ndim - 1) + [(0, hp - h)]
    parts = [jnp.pad(w[..., k * h:(k + 1) * h], pad) for k in range(4)]
    return jnp.concatenate(parts, axis=-1)


def prepare_params(params, matmul_dtype=jnp.float32):
    """One-time padding/layout of the weights (keep off the per-call path).

    matmul_dtype=jnp.bfloat16 is a v6e/v7x opt-in for the MXU operands only
    (w_hh, w_lin); gate math and accumulation stay f32.  Default f32 matches
    the PyTorch reference numerics.
    """
    H = params["w_hh_T"].shape[0]
    O = params["w_lin_T"].shape[1]
    Hp = _round_up(max(H, 128), 128)
    Op = _round_up(max(O, 128), 128)
    w_ih_p = _pad_gate_axis(params["w_ih_T"], H, Hp)                  # (I, 4Hp)
    w_hh_p = _pad_gate_axis(
        jnp.pad(params["w_hh_T"], ((0, Hp - H), (0, 0))), H, Hp
    ).astype(matmul_dtype)                                            # (Hp, 4Hp)
    b_p = _pad_gate_axis(params["b"], H, Hp)                          # (1, 4Hp)
    w_lin_p = jnp.pad(params["w_lin_T"],
                      ((0, Hp - H), (0, Op - O))).astype(matmul_dtype)  # (Hp, Op)
    b_lin_p = jnp.pad(params["b_lin"], ((0, 0), (0, Op - O)))         # (1, Op)
    return {"w_ih_T": w_ih_p, "w_hh_T": w_hh_p, "b": b_p,
            "w_lin_T": w_lin_p, "b_lin": b_lin_p}


@functools.partial(jax.jit, static_argnames=("forcast_steps", "out_size"))
def lstm_forward(input_seq, padded_params, *, forcast_steps, out_size):
    """input_seq: (B, T, I) float32 -> (B, forcast_steps, out_size) float32."""
    B, T, I = input_seq.shape
    Hp = padded_params["w_hh_T"].shape[0]
    Op = padded_params["w_lin_T"].shape[1]
    F = forcast_steps

    # Batch padded to a sublane multiple; input feature dim left unpadded (the
    # kernel uses a VPU outer product when I == 1).  All padding is zeros.
    Bp = _round_up(max(B, 8), 8)
    x_tm = jnp.transpose(input_seq, (1, 0, 2))                 # (T, B, I)
    x_tm = jnp.pad(x_tm, ((0, 0), (0, Bp - B), (0, 0)))        # (T, Bp, I)
    x2d = x_tm.reshape(T * Bp, I)

    kernel = functools.partial(
        lstm_kernel, seq_len=T, batch_pad=Bp, hidden_pad=Hp,
        forecast_steps=F, scalar_input=(I == 1))

    out2d = pl.pallas_call(
        kernel,
        out_shape=jax.ShapeDtypeStruct((F * Bp, Op), jnp.float32),
        in_specs=[
            pl.BlockSpec(memory_space=pltpu.MemorySpace.VMEM),  # x2d
            pl.BlockSpec(memory_space=pltpu.MemorySpace.VMEM),  # w_ih_T
            pl.BlockSpec(memory_space=pltpu.MemorySpace.VMEM),  # w_hh_T
            pl.BlockSpec(memory_space=pltpu.MemorySpace.VMEM),  # b
            pl.BlockSpec(memory_space=pltpu.MemorySpace.VMEM),  # w_lin_T
            pl.BlockSpec(memory_space=pltpu.MemorySpace.VMEM),  # b_lin
        ],
        out_specs=pl.BlockSpec(memory_space=pltpu.MemorySpace.VMEM),
    )(x2d, padded_params["w_ih_T"], padded_params["w_hh_T"], padded_params["b"],
      padded_params["w_lin_T"], padded_params["b_lin"])

    pred = out2d.reshape(F, Bp, Op)[:, :B, :out_size]   # (F, B, O), t = T-F..T-1
    return jnp.transpose(pred, (1, 0, 2))               # == predictions[:, -F:, :]


def init_params(key, input_size, hidden_size, output_size):
    """Deterministic parameter init (uniform +-1/sqrt(H), like PyTorch's LSTM)."""
    k = 1.0 / jnp.sqrt(jnp.float32(hidden_size))
    keys = jax.random.split(key, 6)
    w_ih = jax.random.uniform(keys[0], (4 * hidden_size, input_size), jnp.float32, -k, k)
    w_hh = jax.random.uniform(keys[1], (4 * hidden_size, hidden_size), jnp.float32, -k, k)
    b_ih = jax.random.uniform(keys[2], (4 * hidden_size,), jnp.float32, -k, k)
    b_hh = jax.random.uniform(keys[3], (4 * hidden_size,), jnp.float32, -k, k)
    w_lin = jax.random.uniform(keys[4], (output_size, hidden_size), jnp.float32, -k, k)
    b_lin = jax.random.uniform(keys[5], (output_size,), jnp.float32, -k, k)
    return {
        "w_ih_T": w_ih.T,                                   # (I, 4H)
        "w_hh_T": w_hh.T,                                   # (H, 4H)
        "b": (b_ih + b_hh).reshape(1, 4 * hidden_size),     # (1, 4H)
        "w_lin_T": w_lin.T,                                 # (H, O)
        "b_lin": b_lin.reshape(1, output_size),             # (1, O)
    }


def lstm_forward_ref(input_seq, params, forcast_steps):
    """Pure-JAX reference (lax.scan) mirroring torch.nn.LSTM + Linear semantics."""
    B, T, I = input_seq.shape
    H = params["w_hh_T"].shape[0]

    def step(carry, x_t):
        h, c = carry
        gates = x_t @ params["w_ih_T"] + h @ params["w_hh_T"] + params["b"]
        i_g = jax.nn.sigmoid(gates[:, 0:H])
        f_g = jax.nn.sigmoid(gates[:, H:2 * H])
        g_g = jnp.tanh(gates[:, 2 * H:3 * H])
        o_g = jax.nn.sigmoid(gates[:, 3 * H:4 * H])
        c = f_g * c + i_g * g_g
        h = o_g * jnp.tanh(c)
        return (h, c), h

    h0 = jnp.zeros((B, H), jnp.float32)
    c0 = jnp.zeros((B, H), jnp.float32)
    _, hs = lax.scan(step, (h0, c0), jnp.transpose(input_seq, (1, 0, 2)))
    lstm_out = jnp.transpose(hs, (1, 0, 2))                 # (B, T, H)
    pred = lstm_out @ params["w_lin_T"] + params["b_lin"]   # (B, T, O)
    return pred[:, -forcast_steps:, :]


if __name__ == "__main__":
    key = jax.random.PRNGKey(0)
    k1, k2, k3, k4 = jax.random.split(key, 4)

    # --- Config 1: the module's defaults (forcast_steps = output_size = 1). ---
    forcast_steps = 1
    input_size = 1
    hidden_layer_size = 64
    output_size = forcast_steps
    B, T = 2, 8

    params1 = init_params(k1, input_size, hidden_layer_size, output_size)
    padded1 = prepare_params(params1)                 # one-time weight padding
    x1 = jax.random.normal(k2, (B, T, input_size), jnp.float32)

    out1 = lstm_forward(x1, padded1, forcast_steps=forcast_steps,
                        out_size=output_size)
    out1 = jax.block_until_ready(out1)
    assert out1.shape == (B, forcast_steps, output_size), out1.shape
    ref1 = lstm_forward_ref(x1, params1, forcast_steps)
    assert jnp.allclose(out1, ref1, atol=5e-5, rtol=5e-5), (out1, ref1)

    # --- Config 2: forecast tail > 1 (exercises the in-kernel tail concat). ---
    F2, O2, B2, T2 = 2, 2, 3, 8
    params2 = init_params(k3, input_size, hidden_layer_size, O2)
    padded2 = prepare_params(params2)
    x2 = jax.random.normal(k4, (B2, T2, input_size), jnp.float32)

    out2 = lstm_forward(x2, padded2, forcast_steps=F2, out_size=O2)
    out2 = jax.block_until_ready(out2)
    assert out2.shape == (B2, F2, O2), out2.shape
    ref2 = lstm_forward_ref(x2, params2, F2)
    assert jnp.allclose(out2, ref2, atol=5e-5, rtol=5e-5), (out2, ref2)

    print("KERNEL_OK")
</pallas_src>

<mosaic_0001>
module attributes {stable_mosaic.version = 11 : i64} {
  func.func @lstm_kernel(%arg0: memref<64x1xf32, #tpu.memory_space<vmem>>, %arg1: memref<1x512xf32, #tpu.memory_space<vmem>>, %arg2: memref<128x512xf32, #tpu.memory_space<vmem>>, %arg3: memref<1x512xf32, #tpu.memory_space<vmem>>, %arg4: memref<128x128xf32, #tpu.memory_space<vmem>>, %arg5: memref<1x128xf32, #tpu.memory_space<vmem>>, %arg6: memref<8x128xf32, #tpu.memory_space<vmem>>) attributes {dimension_semantics = [], scalar_prefetch = 0 : i64, scratch_operands = 0 : i64, tpu.core_type = #tpu.core_type<tc>} {
    %c0 = arith.constant 0 : index
    %c0_0 = arith.constant 0 : index
    %0 = vector.load %arg1[%c0, %c0_0] : memref<1x512xf32, #tpu.memory_space<vmem>>, vector<1x512xf32>
    %c0_1 = arith.constant 0 : index
    %c0_2 = arith.constant 0 : index
    %1 = vector.load %arg3[%c0_1, %c0_2] : memref<1x512xf32, #tpu.memory_space<vmem>>, vector<1x512xf32>
    %cst = arith.constant 0.000000e+00 : f32
    %2 = vector.broadcast %cst : f32 to vector<8x128xf32>
    %cst_3 = arith.constant 0.000000e+00 : f32
    %3 = vector.broadcast %cst_3 : f32 to vector<8x128xf32>
    %c0_4 = arith.constant 0 : index
    %c0_5 = arith.constant 0 : index
    %4 = vector.load %arg0[%c0_4, %c0_5] : memref<64x1xf32, #tpu.memory_space<vmem>>, vector<8x1xf32>
    %5 = vector.broadcast %4 : vector<8x1xf32> to vector<8x512xf32>
    %6 = vector.broadcast %0 : vector<1x512xf32> to vector<8x512xf32>
    %7 = arith.mulf %5, %6 : vector<8x512xf32>
    %8 = vector.broadcast %1 : vector<1x512xf32> to vector<8x512xf32>
    %9 = arith.addf %7, %8 : vector<8x512xf32>
    %c0_6 = arith.constant 0 : index
    %c0_7 = arith.constant 0 : index
    %10 = vector.load %arg2[%c0_6, %c0_7] : memref<128x512xf32, #tpu.memory_space<vmem>>, vector<128x512xf32>
    %cst_8 = arith.constant dense<0.000000e+00> : vector<8x512xf32>
    %11 = tpu.matmul %2, %10, %cst_8 {dimension_numbers = #tpu.dot_dimension_numbers<[1], [0], [0], [1], [0, 0, 1, 1], [], []>} : vector<8x128xf32>, vector<128x512xf32>, vector<8x512xf32> -> vector<8x512xf32>
    %12 = arith.addf %9, %11 : vector<8x512xf32>
    %13 = vector.extract_strided_slice %12 {offsets = [0, 0], sizes = [8, 128], strides = [1, 1]} : vector<8x512xf32> to vector<8x128xf32>
    %cst_9 = arith.constant 5.000000e-01 : f32
    %14 = vector.broadcast %cst_9 : f32 to vector<8x128xf32>
    %15 = arith.mulf %14, %13 : vector<8x128xf32>
    %16 = math.tanh %15 : vector<8x128xf32>
    %cst_10 = arith.constant 5.000000e-01 : f32
    %17 = vector.broadcast %cst_10 : f32 to vector<8x128xf32>
    %18 = arith.mulf %17, %16 : vector<8x128xf32>
    %cst_11 = arith.constant 5.000000e-01 : f32
    %19 = vector.broadcast %cst_11 : f32 to vector<8x128xf32>
    %20 = arith.addf %18, %19 : vector<8x128xf32>
    %21 = vector.extract_strided_slice %12 {offsets = [0, 128], sizes = [8, 128], strides = [1, 1]} : vector<8x512xf32> to vector<8x128xf32>
    %cst_12 = arith.constant 5.000000e-01 : f32
    %22 = vector.broadcast %cst_12 : f32 to vector<8x128xf32>
    %23 = arith.mulf %22, %21 : vector<8x128xf32>
    %24 = math.tanh %23 : vector<8x128xf32>
    %cst_13 = arith.constant 5.000000e-01 : f32
    %25 = vector.broadcast %cst_13 : f32 to vector<8x128xf32>
    %26 = arith.mulf %25, %24 : vector<8x128xf32>
    %cst_14 = arith.constant 5.000000e-01 : f32
    %27 = vector.broadcast %cst_14 : f32 to vector<8x128xf32>
    %28 = arith.addf %26, %27 : vector<8x128xf32>
    %29 = vector.extract_strided_slice %12 {offsets = [0, 256], sizes = [8, 128], strides = [1, 1]} : vector<8x512xf32> to vector<8x128xf32>
    %30 = math.tanh %29 : vector<8x128xf32>
    %31 = vector.extract_strided_slice %12 {offsets = [0, 384], sizes = [8, 128], strides = [1, 1]} : vector<8x512xf32> to vector<8x128xf32>
    %cst_15 = arith.constant 5.000000e-01 : f32
    %32 = vector.broadcast %cst_15 : f32 to vector<8x128xf32>
    %33 = arith.mulf %32, %31 : vector<8x128xf32>
    %34 = math.tanh %33 : vector<8x128xf32>
    %cst_16 = arith.constant 5.000000e-01 : f32
    %35 = vector.broadcast %cst_16 : f32 to vector<8x128xf32>
    %36 = arith.mulf %35, %34 : vector<8x128xf32>
    %cst_17 = arith.constant 5.000000e-01 : f32
    %37 = vector.broadcast %cst_17 : f32 to vector<8x128xf32>
    %38 = arith.addf %36, %37 : vector<8x128xf32>
    %39 = arith.mulf %28, %3 : vector<8x128xf32>
    %40 = arith.mulf %20, %30 : vector<8x128xf32>
    %41 = arith.addf %39, %40 : vector<8x128xf32>
    %42 = math.tanh %41 : vector<8x128xf32>
    %43 = arith.mulf %38, %42 : vector<8x128xf32>
    %c8 = arith.constant 8 : index
    %c0_18 = arith.constant 0 : index
    %44 = vector.load %arg0[%c8, %c0_18] : memref<64x1xf32, #tpu.memory_space<vmem>>, vector<8x1xf32>
    %45 = vector.broadcast %44 : vector<8x1xf32> to vector<8x512xf32>
    %46 = vector.broadcast %0 : vector<1x512xf32> to vector<8x512xf32>
    %47 = arith.mulf %45, %46 : vector<8x512xf32>
    %48 = vector.broadcast %1 : vector<1x512xf32> to vector<8x512xf32>
    %49 = arith.addf %47, %48 : vector<8x512xf32>
    %c0_19 = arith.constant 0 : index
    %c0_20 = arith.constant 0 : index
    %50 = vector.load %arg2[%c0_19, %c0_20] : memref<128x512xf32, #tpu.memory_space<vmem>>, vector<128x512xf32>
    %cst_21 = arith.constant dense<0.000000e+00> : vector<8x512xf32>
    %51 = tpu.matmul %43, %50, %cst_21 {dimension_numbers = #tpu.dot_dimension_numbers<[1], [0], [0], [1], [0, 0, 1, 1], [], []>} : vector<8x128xf32>, vector<128x512xf32>, vector<8x512xf32> -> vector<8x512xf32>
    %52 = arith.addf %49, %51 : vector<8x512xf32>
    %53 = vector.extract_strided_slice %52 {offsets = [0, 0], sizes = [8, 128], strides = [1, 1]} : vector<8x512xf32> to vector<8x128xf32>
    %cst_22 = arith.constant 5.000000e-01 : f32
    %54 = vector.broadcast %cst_22 : f32 to vector<8x128xf32>
    %55 = arith.mulf %54, %53 : vector<8x128xf32>
    %56 = math.tanh %55 : vector<8x128xf32>
    %cst_23 = arith.constant 5.000000e-01 : f32
    %57 = vector.broadcast %cst_23 : f32 to vector<8x128xf32>
    %58 = arith.mulf %57, %56 : vector<8x128xf32>
    %cst_24 = arith.constant 5.000000e-01 : f32
    %59 = vector.broadcast %cst_24 : f32 to vector<8x128xf32>
    %60 = arith.addf %58, %59 : vector<8x128xf32>
    %61 = vector.extract_strided_slice %52 {offsets = [0, 128], sizes = [8, 128], strides = [1, 1]} : vector<8x512xf32> to vector<8x128xf32>
    %cst_25 = arith.constant 5.000000e-01 : f32
    %62 = vector.broadcast %cst_25 : f32 to vector<8x128xf32>
    %63 = arith.mulf %62, %61 : vector<8x128xf32>
    %64 = math.tanh %63 : vector<8x128xf32>
    %cst_26 = arith.constant 5.000000e-01 : f32
    %65 = vector.broadcast %cst_26 : f32 to vector<8x128xf32>
    %66 = arith.mulf %65, %64 : vector<8x128xf32>
    %cst_27 = arith.constant 5.000000e-01 : f32
    %67 = vector.broadcast %cst_27 : f32 to vector<8x128xf32>
    %68 = arith.addf %66, %67 : vector<8x128xf32>
    %69 = vector.extract_strided_slice %52 {offsets = [0, 256], sizes = [8, 128], strides = [1, 1]} : vector<8x512xf32> to vector<8x128xf32>
    %70 = math.tanh %69 : vector<8x128xf32>
    %71 = vector.extract_strided_slice %52 {offsets = [0, 384], sizes = [8, 128], strides = [1, 1]} : vector<8x512xf32> to vector<8x128xf32>
    %cst_28 = arith.constant 5.000000e-01 : f32
    %72 = vector.broadcast %cst_28 : f32 to vector<8x128xf32>
    %73 = arith.mulf %72, %71 : vector<8x128xf32>
    %74 = math.tanh %73 : vector<8x128xf32>
    %cst_29 = arith.constant 5.000000e-01 : f32
    %75 = vector.broadcast %cst_29 : f32 to vector<8x128xf32>
    %76 = arith.mulf %75, %74 : vector<8x128xf32>
    %cst_30 = arith.constant 5.000000e-01 : f32
    %77 = vector.broadcast %cst_30 : f32 to vector<8x128xf32>
    %78 = arith.addf %76, %77 : vector<8x128xf32>
    %79 = arith.mulf %68, %41 : vector<8x128xf32>
    %80 = arith.mulf %60, %70 : vector<8x128xf32>
    %81 = arith.addf %79, %80 : vector<8x128xf32>
    %82 = math.tanh %81 : vector<8x128xf32>
    %83 = arith.mulf %78, %82 : vector<8x128xf32>
    %c16 = arith.constant 16 : index
    %c0_31 = arith.constant 0 : index
    %84 = vector.load %arg0[%c16, %c0_31] : memref<64x1xf32, #tpu.memory_space<vmem>>, vector<8x1xf32>
    %85 = vector.broadcast %84 : vector<8x1xf32> to vector<8x512xf32>
    %86 = vector.broadcast %0 : vector<1x512xf32> to vector<8x512xf32>
    %87 = arith.mulf %85, %86 : vector<8x512xf32>
    %88 = vector.broadcast %1 : vector<1x512xf32> to vector<8x512xf32>
    %89 = arith.addf %87, %88 : vector<8x512xf32>
    %c0_32 = arith.constant 0 : index
    %c0_33 = arith.constant 0 : index
    %90 = vector.load %arg2[%c0_32, %c0_33] : memref<128x512xf32, #tpu.memory_space<vmem>>, vector<128x512xf32>
    %cst_34 = arith.constant dense<0.000000e+00> : vector<8x512xf32>
    %91 = tpu.matmul %83, %90, %cst_34 {dimension_numbers = #tpu.dot_dimension_numbers<[1], [0], [0], [1], [0, 0, 1, 1], [], []>} : vector<8x128xf32>, vector<128x512xf32>, vector<8x512xf32> -> vector<8x512xf32>
    %92 = arith.addf %89, %91 : vector<8x512xf32>
    %93 = vector.extract_strided_slice %92 {offsets = [0, 0], sizes = [8, 128], strides = [1, 1]} : vector<8x512xf32> to vector<8x128xf32>
    %cst_35 = arith.constant 5.000000e-01 : f32
    %94 = vector.broadcast %cst_35 : f32 to vector<8x128xf32>
    %95 = arith.mulf %94, %93 : vector<8x128xf32>
    %96 = math.tanh %95 : vector<8x128xf32>
    %cst_36 = arith.constant 5.000000e-01 : f32
    %97 = vector.broadcast %cst_36 : f32 to vector<8x128xf32>
    %98 = arith.mulf %97, %96 : vector<8x128xf32>
    %cst_37 = arith.constant 5.000000e-01 : f32
    %99 = vector.broadcast %cst_37 : f32 to vector<8x128xf32>
    %100 = arith.addf %98, %99 : vector<8x128xf32>
    %101 = vector.extract_strided_slice %92 {offsets = [0, 128], sizes = [8, 128], strides = [1, 1]} : vector<8x512xf32> to vector<8x128xf32>
    %cst_38 = arith.constant 5.000000e-01 : f32
    %102 = vector.broadcast %cst_38 : f32 to vector<8x128xf32>
    %103 = arith.mulf %102, %101 : vector<8x128xf32>
    %104 = math.tanh %103 : vector<8x128xf32>
    %cst_39 = arith.constant 5.000000e-01 : f32
    %105 = vector.broadcast %cst_39 : f32 to vector<8x128xf32>
    %106 = arith.mulf %105, %104 : vector<8x128xf32>
    %cst_40 = arith.constant 5.000000e-01 : f32
    %107 = vector.broadcast %cst_40 : f32 to vector<8x128xf32>
    %108 = arith.addf %106, %107 : vector<8x128xf32>
    %109 = vector.extract_strided_slice %92 {offsets = [0, 256], sizes = [8, 128], strides = [1, 1]} : vector<8x512xf32> to vector<8x128xf32>
    %110 = math.tanh %109 : vector<8x128xf32>
    %111 = vector.extract_strided_slice %92 {offsets = [0, 384], sizes = [8, 128], strides = [1, 1]} : vector<8x512xf32> to vector<8x128xf32>
    %cst_41 = arith.constant 5.000000e-01 : f32
    %112 = vector.broadcast %cst_41 : f32 to vector<8x128xf32>
    %113 = arith.mulf %112, %111 : vector<8x128xf32>
    %114 = math.tanh %113 : vector<8x128xf32>
    %cst_42 = arith.constant 5.000000e-01 : f32
    %115 = vector.broadcast %cst_42 : f32 to vector<8x128xf32>
    %116 = arith.mulf %115, %114 : vector<8x128xf32>
    %cst_43 = arith.constant 5.000000e-01 : f32
    %117 = vector.broadcast %cst_43 : f32 to vector<8x128xf32>
    %118 = arith.addf %116, %117 : vector<8x128xf32>
    %119 = arith.mulf %108, %81 : vector<8x128xf32>
    %120 = arith.mulf %100, %110 : vector<8x128xf32>
    %121 = arith.addf %119, %120 : vector<8x128xf32>
    %122 = math.tanh %121 : vector<8x128xf32>
    %123 = arith.mulf %118, %122 : vector<8x128xf32>
    %c24 = arith.constant 24 : index
    %c0_44 = arith.constant 0 : index
    %124 = vector.load %arg0[%c24, %c0_44] : memref<64x1xf32, #tpu.memory_space<vmem>>, vector<8x1xf32>
    %125 = vector.broadcast %124 : vector<8x1xf32> to vector<8x512xf32>
    %126 = vector.broadcast %0 : vector<1x512xf32> to vector<8x512xf32>
    %127 = arith.mulf %125, %126 : vector<8x512xf32>
    %128 = vector.broadcast %1 : vector<1x512xf32> to vector<8x512xf32>
    %129 = arith.addf %127, %128 : vector<8x512xf32>
    %c0_45 = arith.constant 0 : index
    %c0_46 = arith.constant 0 : index
    %130 = vector.load %arg2[%c0_45, %c0_46] : memref<128x512xf32, #tpu.memory_space<vmem>>, vector<128x512xf32>
    %cst_47 = arith.constant dense<0.000000e+00> : vector<8x512xf32>
    %131 = tpu.matmul %123, %130, %cst_47 {dimension_numbers = #tpu.dot_dimension_numbers<[1], [0], [0], [1], [0, 0, 1, 1], [], []>} : vector<8x128xf32>, vector<128x512xf32>, vector<8x512xf32> -> vector<8x512xf32>
    %132 = arith.addf %129, %131 : vector<8x512xf32>
    %133 = vector.extract_strided_slice %132 {offsets = [0, 0], sizes = [8, 128], strides = [1, 1]} : vector<8x512xf32> to vector<8x128xf32>
    %cst_48 = arith.constant 5.000000e-01 : f32
    %134 = vector.broadcast %cst_48 : f32 to vector<8x128xf32>
    %135 = arith.mulf %134, %133 : vector<8x128xf32>
    %136 = math.tanh %135 : vector<8x128xf32>
    %cst_49 = arith.constant 5.000000e-01 : f32
    %137 = vector.broadcast %cst_49 : f32 to vector<8x128xf32>
    %138 = arith.mulf %137, %136 : vector<8x128xf32>
    %cst_50 = arith.constant 5.000000e-01 : f32
    %139 = vector.broadcast %cst_50 : f32 to vector<8x128xf32>
    %140 = arith.addf %138, %139 : vector<8x128xf32>
    %141 = vector.extract_strided_slice %132 {offsets = [0, 128], sizes = [8, 128], strides = [1, 1]} : vector<8x512xf32> to vector<8x128xf32>
    %cst_51 = arith.constant 5.000000e-01 : f32
    %142 = vector.broadcast %cst_51 : f32 to vector<8x128xf32>
    %143 = arith.mulf %142, %141 : vector<8x128xf32>
    %144 = math.tanh %143 : vector<8x128xf32>
    %cst_52 = arith.constant 5.000000e-01 : f32
    %145 = vector.broadcast %cst_52 : f32 to vector<8x128xf32>
    %146 = arith.mulf %145, %144 : vector<8x128xf32>
    %cst_53 = arith.constant 5.000000e-01 : f32
    %147 = vector.broadcast %cst_53 : f32 to vector<8x128xf32>
    %148 = arith.addf %146, %147 : vector<8x128xf32>
    %149 = vector.extract_strided_slice %132 {offsets = [0, 256], sizes = [8, 128], strides = [1, 1]} : vector<8x512xf32> to vector<8x128xf32>
    %150 = math.tanh %149 : vector<8x128xf32>
    %151 = vector.extract_strided_slice %132 {offsets = [0, 384], sizes = [8, 128], strides = [1, 1]} : vector<8x512xf32> to vector<8x128xf32>
    %cst_54 = arith.constant 5.000000e-01 : f32
    %152 = vector.broadcast %cst_54 : f32 to vector<8x128xf32>
    %153 = arith.mulf %152, %151 : vector<8x128xf32>
    %154 = math.tanh %153 : vector<8x128xf32>
    %cst_55 = arith.constant 5.000000e-01 : f32
    %155 = vector.broadcast %cst_55 : f32 to vector<8x128xf32>
    %156 = arith.mulf %155, %154 : vector<8x128xf32>
    %cst_56 = arith.constant 5.000000e-01 : f32
    %157 = vector.broadcast %cst_56 : f32 to vector<8x128xf32>
    %158 = arith.addf %156, %157 : vector<8x128xf32>
    %159 = arith.mulf %148, %121 : vector<8x128xf32>
    %160 = arith.mulf %140, %150 : vector<8x128xf32>
    %161 = arith.addf %159, %160 : vector<8x128xf32>
    %162 = math.tanh %161 : vector<8x128xf32>
    %163 = arith.mulf %158, %162 : vector<8x128xf32>
    %c32 = arith.constant 32 : index
    %c0_57 = arith.constant 0 : index
    %164 = vector.load %arg0[%c32, %c0_57] : memref<64x1xf32, #tpu.memory_space<vmem>>, vector<8x1xf32>
    %165 = vector.broadcast %164 : vector<8x1xf32> to vector<8x512xf32>
    %166 = vector.broadcast %0 : vector<1x512xf32> to vector<8x512xf32>
    %167 = arith.mulf %165, %166 : vector<8x512xf32>
    %168 = vector.broadcast %1 : vector<1x512xf32> to vector<8x512xf32>
    %169 = arith.addf %167, %168 : vector<8x512xf32>
    %c0_58 = arith.constant 0 : index
    %c0_59 = arith.constant 0 : index
    %170 = vector.load %arg2[%c0_58, %c0_59] : memref<128x512xf32, #tpu.memory_space<vmem>>, vector<128x512xf32>
    %cst_60 = arith.constant dense<0.000000e+00> : vector<8x512xf32>
    %171 = tpu.matmul %163, %170, %cst_60 {dimension_numbers = #tpu.dot_dimension_numbers<[1], [0], [0], [1], [0, 0, 1, 1], [], []>} : vector<8x128xf32>, vector<128x512xf32>, vector<8x512xf32> -> vector<8x512xf32>
    %172 = arith.addf %169, %171 : vector<8x512xf32>
    %173 = vector.extract_strided_slice %172 {offsets = [0, 0], sizes = [8, 128], strides = [1, 1]} : vector<8x512xf32> to vector<8x128xf32>
    %cst_61 = arith.constant 5.000000e-01 : f32
    %174 = vector.broadcast %cst_61 : f32 to vector<8x128xf32>
    %175 = arith.mulf %174, %173 : vector<8x128xf32>
    %176 = math.tanh %175 : vector<8x128xf32>
    %cst_62 = arith.constant 5.000000e-01 : f32
    %177 = vector.broadcast %cst_62 : f32 to vector<8x128xf32>
    %178 = arith.mulf %177, %176 : vector<8x128xf32>
    %cst_63 = arith.constant 5.000000e-01 : f32
    %179 = vector.broadcast %cst_63 : f32 to vector<8x128xf32>
    %180 = arith.addf %178, %179 : vector<8x128xf32>
    %181 = vector.extract_strided_slice %172 {offsets = [0, 128], sizes = [8, 128], strides = [1, 1]} : vector<8x512xf32> to vector<8x128xf32>
    %cst_64 = arith.constant 5.000000e-01 : f32
    %182 = vector.broadcast %cst_64 : f32 to vector<8x128xf32>
    %183 = arith.mulf %182, %181 : vector<8x128xf32>
    %184 = math.tanh %183 : vector<8x128xf32>
    %cst_65 = arith.constant 5.000000e-01 : f32
    %185 = vector.broadcast %cst_65 : f32 to vector<8x128xf32>
    %186 = arith.mulf %185, %184 : vector<8x128xf32>
    %cst_66 = arith.constant 5.000000e-01 : f32
    %187 = vector.broadcast %cst_66 : f32 to vector<8x128xf32>
    %188 = arith.addf %186, %187 : vector<8x128xf32>
    %189 = vector.extract_strided_slice %172 {offsets = [0, 256], sizes = [8, 128], strides = [1, 1]} : vector<8x512xf32> to vector<8x128xf32>
    %190 = math.tanh %189 : vector<8x128xf32>
    %191 = vector.extract_strided_slice %172 {offsets = [0, 384], sizes = [8, 128], strides = [1, 1]} : vector<8x512xf32> to vector<8x128xf32>
    %cst_67 = arith.constant 5.000000e-01 : f32
    %192 = vector.broadcast %cst_67 : f32 to vector<8x128xf32>
    %193 = arith.mulf %192, %191 : vector<8x128xf32>
    %194 = math.tanh %193 : vector<8x128xf32>
    %cst_68 = arith.constant 5.000000e-01 : f32
    %195 = vector.broadcast %cst_68 : f32 to vector<8x128xf32>
    %196 = arith.mulf %195, %194 : vector<8x128xf32>
    %cst_69 = arith.constant 5.000000e-01 : f32
    %197 = vector.broadcast %cst_69 : f32 to vector<8x128xf32>
    %198 = arith.addf %196, %197 : vector<8x128xf32>
    %199 = arith.mulf %188, %161 : vector<8x128xf32>
    %200 = arith.mulf %180, %190 : vector<8x128xf32>
    %201 = arith.addf %199, %200 : vector<8x128xf32>
    %202 = math.tanh %201 : vector<8x128xf32>
    %203 = arith.mulf %198, %202 : vector<8x128xf32>
    %c40 = arith.constant 40 : index
    %c0_70 = arith.constant 0 : index
    %204 = vector.load %arg0[%c40, %c0_70] : memref<64x1xf32, #tpu.memory_space<vmem>>, vector<8x1xf32>
    %205 = vector.broadcast %204 : vector<8x1xf32> to vector<8x512xf32>
    %206 = vector.broadcast %0 : vector<1x512xf32> to vector<8x512xf32>
    %207 = arith.mulf %205, %206 : vector<8x512xf32>
    %208 = vector.broadcast %1 : vector<1x512xf32> to vector<8x512xf32>
    %209 = arith.addf %207, %208 : vector<8x512xf32>
    %c0_71 = arith.constant 0 : index
    %c0_72 = arith.constant 0 : index
    %210 = vector.load %arg2[%c0_71, %c0_72] : memref<128x512xf32, #tpu.memory_space<vmem>>, vector<128x512xf32>
    %cst_73 = arith.constant dense<0.000000e+00> : vector<8x512xf32>
    %211 = tpu.matmul %203, %210, %cst_73 {dimension_numbers = #tpu.dot_dimension_numbers<[1], [0], [0], [1], [0, 0, 1, 1], [], []>} : vector<8x128xf32>, vector<128x512xf32>, vector<8x512xf32> -> vector<8x512xf32>
    %212 = arith.addf %209, %211 : vector<8x512xf32>
    %213 = vector.extract_strided_slice %212 {offsets = [0, 0], sizes = [8, 128], strides = [1, 1]} : vector<8x512xf32> to vector<8x128xf32>
    %cst_74 = arith.constant 5.000000e-01 : f32
    %214 = vector.broadcast %cst_74 : f32 to vector<8x128xf32>
    %215 = arith.mulf %214, %213 : vector<8x128xf32>
    %216 = math.tanh %215 : vector<8x128xf32>
    %cst_75 = arith.constant 5.000000e-01 : f32
    %217 = vector.broadcast %cst_75 : f32 to vector<8x128xf32>
    %218 = arith.mulf %217, %216 : vector<8x128xf32>
    %cst_76 = arith.constant 5.000000e-01 : f32
    %219 = vector.broadcast %cst_76 : f32 to vector<8x128xf32>
    %220 = arith.addf %218, %219 : vector<8x128xf32>
    %221 = vector.extract_strided_slice %212 {offsets = [0, 128], sizes = [8, 128], strides = [1, 1]} : vector<8x512xf32> to vector<8x128xf32>
    %cst_77 = arith.constant 5.000000e-01 : f32
    %222 = vector.broadcast %cst_77 : f32 to vector<8x128xf32>
    %223 = arith.mulf %222, %221 : vector<8x128xf32>
    %224 = math.tanh %223 : vector<8x128xf32>
    %cst_78 = arith.constant 5.000000e-01 : f32
    %225 = vector.broadcast %cst_78 : f32 to vector<8x128xf32>
    %226 = arith.mulf %225, %224 : vector<8x128xf32>
    %cst_79 = arith.constant 5.000000e-01 : f32
    %227 = vector.broadcast %cst_79 : f32 to vector<8x128xf32>
    %228 = arith.addf %226, %227 : vector<8x128xf32>
    %229 = vector.extract_strided_slice %212 {offsets = [0, 256], sizes = [8, 128], strides = [1, 1]} : vector<8x512xf32> to vector<8x128xf32>
    %230 = math.tanh %229 : vector<8x128xf32>
    %231 = vector.extract_strided_slice %212 {offsets = [0, 384], sizes = [8, 128], strides = [1, 1]} : vector<8x512xf32> to vector<8x128xf32>
    %cst_80 = arith.constant 5.000000e-01 : f32
    %232 = vector.broadcast %cst_80 : f32 to vector<8x128xf32>
    %233 = arith.mulf %232, %231 : vector<8x128xf32>
    %234 = math.tanh %233 : vector<8x128xf32>
    %cst_81 = arith.constant 5.000000e-01 : f32
    %235 = vector.broadcast %cst_81 : f32 to vector<8x128xf32>
    %236 = arith.mulf %235, %234 : vector<8x128xf32>
    %cst_82 = arith.constant 5.000000e-01 : f32
    %237 = vector.broadcast %cst_82 : f32 to vector<8x128xf32>
    %238 = arith.addf %236, %237 : vector<8x128xf32>
    %239 = arith.mulf %228, %201 : vector<8x128xf32>
    %240 = arith.mulf %220, %230 : vector<8x128xf32>
    %241 = arith.addf %239, %240 : vector<8x128xf32>
    %242 = math.tanh %241 : vector<8x128xf32>
    %243 = arith.mulf %238, %242 : vector<8x128xf32>
    %c48 = arith.constant 48 : index
    %c0_83 = arith.constant 0 : index
    %244 = vector.load %arg0[%c48, %c0_83] : memref<64x1xf32, #tpu.memory_space<vmem>>, vector<8x1xf32>
    %245 = vector.broadcast %244 : vector<8x1xf32> to vector<8x512xf32>
    %246 = vector.broadcast %0 : vector<1x512xf32> to vector<8x512xf32>
    %247 = arith.mulf %245, %246 : vector<8x512xf32>
    %248 = vector.broadcast %1 : vector<1x512xf32> to vector<8x512xf32>
    %249 = arith.addf %247, %248 : vector<8x512xf32>
    %c0_84 = arith.constant 0 : index
    %c0_85 = arith.constant 0 : index
    %250 = vector.load %arg2[%c0_84, %c0_85] : memref<128x512xf32, #tpu.memory_space<vmem>>, vector<128x512xf32>
    %cst_86 = arith.constant dense<0.000000e+00> : vector<8x512xf32>
    %251 = tpu.matmul %243, %250, %cst_86 {dimension_numbers = #tpu.dot_dimension_numbers<[1], [0], [0], [1], [0, 0, 1, 1], [], []>} : vector<8x128xf32>, vector<128x512xf32>, vector<8x512xf32> -> vector<8x512xf32>
    %252 = arith.addf %249, %251 : vector<8x512xf32>
    %253 = vector.extract_strided_slice %252 {offsets = [0, 0], sizes = [8, 128], strides = [1, 1]} : vector<8x512xf32> to vector<8x128xf32>
    %cst_87 = arith.constant 5.000000e-01 : f32
    %254 = vector.broadcast %cst_87 : f32 to vector<8x128xf32>
    %255 = arith.mulf %254, %253 : vector<8x128xf32>
    %256 = math.tanh %255 : vector<8x128xf32>
    %cst_88 = arith.constant 5.000000e-01 : f32
    %257 = vector.broadcast %cst_88 : f32 to vector<8x128xf32>
    %258 = arith.mulf %257, %256 : vector<8x128xf32>
    %cst_89 = arith.constant 5.000000e-01 : f32
    %259 = vector.broadcast %cst_89 : f32 to vector<8x128xf32>
    %260 = arith.addf %258, %259 : vector<8x128xf32>
    %261 = vector.extract_strided_slice %252 {offsets = [0, 128], sizes = [8, 128], strides = [1, 1]} : vector<8x512xf32> to vector<8x128xf32>
    %cst_90 = arith.constant 5.000000e-01 : f32
    %262 = vector.broadcast %cst_90 : f32 to vector<8x128xf32>
    %263 = arith.mulf %262, %261 : vector<8x128xf32>
    %264 = math.tanh %263 : vector<8x128xf32>
    %cst_91 = arith.constant 5.000000e-01 : f32
    %265 = vector.broadcast %cst_91 : f32 to vector<8x128xf32>
    %266 = arith.mulf %265, %264 : vector<8x128xf32>
    %cst_92 = arith.constant 5.000000e-01 : f32
    %267 = vector.broadcast %cst_92 : f32 to vector<8x128xf32>
    %268 = arith.addf %266, %267 : vector<8x128xf32>
    %269 = vector.extract_strided_slice %252 {offsets = [0, 256], sizes = [8, 128], strides = [1, 1]} : vector<8x512xf32> to vector<8x128xf32>
    %270 = math.tanh %269 : vector<8x128xf32>
    %271 = vector.extract_strided_slice %252 {offsets = [0, 384], sizes = [8, 128], strides = [1, 1]} : vector<8x512xf32> to vector<8x128xf32>
    %cst_93 = arith.constant 5.000000e-01 : f32
    %272 = vector.broadcast %cst_93 : f32 to vector<8x128xf32>
    %273 = arith.mulf %272, %271 : vector<8x128xf32>
    %274 = math.tanh %273 : vector<8x128xf32>
    %cst_94 = arith.constant 5.000000e-01 : f32
    %275 = vector.broadcast %cst_94 : f32 to vector<8x128xf32>
    %276 = arith.mulf %275, %274 : vector<8x128xf32>
    %cst_95 = arith.constant 5.000000e-01 : f32
    %277 = vector.broadcast %cst_95 : f32 to vector<8x128xf32>
    %278 = arith.addf %276, %277 : vector<8x128xf32>
    %279 = arith.mulf %268, %241 : vector<8x128xf32>
    %280 = arith.mulf %260, %270 : vector<8x128xf32>
    %281 = arith.addf %279, %280 : vector<8x128xf32>
    %282 = math.tanh %281 : vector<8x128xf32>
    %283 = arith.mulf %278, %282 : vector<8x128xf32>
    %c56 = arith.constant 56 : index
    %c0_96 = arith.constant 0 : index
    %284 = vector.load %arg0[%c56, %c0_96] : memref<64x1xf32, #tpu.memory_space<vmem>>, vector<8x1xf32>
    %285 = vector.broadcast %284 : vector<8x1xf32> to vector<8x512xf32>
    %286 = vector.broadcast %0 : vector<1x512xf32> to vector<8x512xf32>
    %287 = arith.mulf %285, %286 : vector<8x512xf32>
    %288 = vector.broadcast %1 : vector<1x512xf32> to vector<8x512xf32>
    %289 = arith.addf %287, %288 : vector<8x512xf32>
    %c0_97 = arith.constant 0 : index
    %c0_98 = arith.constant 0 : index
    %290 = vector.load %arg2[%c0_97, %c0_98] : memref<128x512xf32, #tpu.memory_space<vmem>>, vector<128x512xf32>
    %cst_99 = arith.constant dense<0.000000e+00> : vector<8x512xf32>
    %291 = tpu.matmul %283, %290, %cst_99 {dimension_numbers = #tpu.dot_dimension_numbers<[1], [0], [0], [1], [0, 0, 1, 1], [], []>} : vector<8x128xf32>, vector<128x512xf32>, vector<8x512xf32> -> vector<8x512xf32>
    %292 = arith.addf %289, %291 : vector<8x512xf32>
    %293 = vector.extract_strided_slice %292 {offsets = [0, 0], sizes = [8, 128], strides = [1, 1]} : vector<8x512xf32> to vector<8x128xf32>
    %cst_100 = arith.constant 5.000000e-01 : f32
    %294 = vector.broadcast %cst_100 : f32 to vector<8x128xf32>
    %295 = arith.mulf %294, %293 : vector<8x128xf32>
    %296 = math.tanh %295 : vector<8x128xf32>
    %cst_101 = arith.constant 5.000000e-01 : f32
    %297 = vector.broadcast %cst_101 : f32 to vector<8x128xf32>
    %298 = arith.mulf %297, %296 : vector<8x128xf32>
    %cst_102 = arith.constant 5.000000e-01 : f32
    %299 = vector.broadcast %cst_102 : f32 to vector<8x128xf32>
    %300 = arith.addf %298, %299 : vector<8x128xf32>
    %301 = vector.extract_strided_slice %292 {offsets = [0, 128], sizes = [8, 128], strides = [1, 1]} : vector<8x512xf32> to vector<8x128xf32>
    %cst_103 = arith.constant 5.000000e-01 : f32
    %302 = vector.broadcast %cst_103 : f32 to vector<8x128xf32>
    %303 = arith.mulf %302, %301 : vector<8x128xf32>
    %304 = math.tanh %303 : vector<8x128xf32>
    %cst_104 = arith.constant 5.000000e-01 : f32
    %305 = vector.broadcast %cst_104 : f32 to vector<8x128xf32>
    %306 = arith.mulf %305, %304 : vector<8x128xf32>
    %cst_105 = arith.constant 5.000000e-01 : f32
    %307 = vector.broadcast %cst_105 : f32 to vector<8x128xf32>
    %308 = arith.addf %306, %307 : vector<8x128xf32>
    %309 = vector.extract_strided_slice %292 {offsets = [0, 256], sizes = [8, 128], strides = [1, 1]} : vector<8x512xf32> to vector<8x128xf32>
    %310 = math.tanh %309 : vector<8x128xf32>
    %311 = vector.extract_strided_slice %292 {offsets = [0, 384], sizes = [8, 128], strides = [1, 1]} : vector<8x512xf32> to vector<8x128xf32>
    %cst_106 = arith.constant 5.000000e-01 : f32
    %312 = vector.broadcast %cst_106 : f32 to vector<8x128xf32>
    %313 = arith.mulf %312, %311 : vector<8x128xf32>
    %314 = math.tanh %313 : vector<8x128xf32>
    %cst_107 = arith.constant 5.000000e-01 : f32
    %315 = vector.broadcast %cst_107 : f32 to vector<8x128xf32>
    %316 = arith.mulf %315, %314 : vector<8x128xf32>
    %cst_108 = arith.constant 5.000000e-01 : f32
    %317 = vector.broadcast %cst_108 : f32 to vector<8x128xf32>
    %318 = arith.addf %316, %317 : vector<8x128xf32>
    %319 = arith.mulf %308, %281 : vector<8x128xf32>
    %320 = arith.mulf %300, %310 : vector<8x128xf32>
    %321 = arith.addf %319, %320 : vector<8x128xf32>
    %322 = math.tanh %321 : vector<8x128xf32>
    %323 = arith.mulf %318, %322 : vector<8x128xf32>
    %c0_109 = arith.constant 0 : index
    %c0_110 = arith.constant 0 : index
    %324 = vector.load %arg4[%c0_109, %c0_110] : memref<128x128xf32, #tpu.memory_space<vmem>>, vector<128x128xf32>
    %cst_111 = arith.constant dense<0.000000e+00> : vector<8x128xf32>
    %325 = tpu.matmul %323, %324, %cst_111 {dimension_numbers = #tpu.dot_dimension_numbers<[1], [0], [0], [1], [0, 0, 1, 1], [], []>} : vector<8x128xf32>, vector<128x128xf32>, vector<8x128xf32> -> vector<8x128xf32>
    %c0_112 = arith.constant 0 : index
    %c0_113 = arith.constant 0 : index
    %326 = vector.load %arg5[%c0_112, %c0_113] : memref<1x128xf32, #tpu.memory_space<vmem>>, vector<1x128xf32>
    %327 = vector.broadcast %326 : vector<1x128xf32> to vector<8x128xf32>
    %328 = arith.addf %325, %327 : vector<8x128xf32>
    %c0_114 = arith.constant 0 : index
    %c0_115 = arith.constant 0 : index
    %329 = vector.load %arg6[%c0_114, %c0_115] : memref<8x128xf32, #tpu.memory_space<vmem>>, vector<8x128xf32>
    tpu.vector_store %arg6[%c0_114, %c0_115], %328 {strides = array<i32>} : memref<8x128xf32, #tpu.memory_space<vmem>>, vector<8x128xf32>,
    return
  }
}

</mosaic_0001>

<bundles_post_ra>
// kernel: lstm_forward.1
= control target key start
LH: loop header
LB: loop body
LE: loop exit
PB: predicated region body
PF: predicated region fallthrough
CT: control target
= control target key end

     0   :  { %11 = vsyncpa [#allocation3], 0  ;;  %s2964_s0 = inlined_call_operand.vmem [shape: f32[64,1], index: 0, kind: input, shape index: {}]   ;;  %s2965_s1 = inlined_call_operand.vmem [shape: f32[1,512], index: 1, kind: input, shape index: {}]   ;;  %s2966_s2 = inlined_call_operand.hbm [shape: f32[128,512], index: 2, kind: input, shape index: {}]   ;;  %s2967_s3 = inlined_call_operand.vmem [shape: f32[1,512], index: 3, kind: input, shape index: {}]   ;;  %s2968_s4 = inlined_call_operand.hbm [shape: f32[128,128], index: 4, kind: input, shape index: {}]   ;;  %s2969_s5 = inlined_call_operand.vmem [shape: f32[1,128], index: 5, kind: input, shape index: {}]   ;;  %s2970_s6 = inlined_call_operand.vmem [shape: f32[8,128], index: 6, kind: output, shape index: {}]  }
   0x1   :  { %12 = vsyncpa [#allocation5], 0  ;;  %s2412_s21 = smov [#allocation2]   ;;  %s2364_s25 = scalar_lea.hbm %s2966_s2, 8192 }
   0x2   :  { %s22_s22 = sshll.u32 %s2412_s21, 4  ;;  %p2365_p0 = scmp.ne.s32.totalorder %s2966_s2, %s2364_s25  ;;  %s23_s22 = int_to_ptr.vmem [resolvable:$true] %s22_s22 }
   0x3   :  { %p2368_p1 = scmp.lt.u32.totalorder %s2364_s25, %s2966_s2 }
   0x5   :  { %p2370_p2 = pnand %p2368_p1, %p2365_p0 }
   0x7   :  { %2373 = shalt.err (!%p2370_p2)
}
   0x8   :  { %s2374_s30 = scalar_lea.vmem %s23_s22, 8192  ;;  %p2379_p4 = scmp.lt.s32.totalorder %s23_s22, %s23_s22 }
   0x9   :  { %p2375_p3 = scmp.ne.s32.totalorder %s23_s22, %s2374_s30  ;;  %p2380_p5 = scmp.lt.s32.totalorder %s2374_s30, %s2374_s30 }
   0xb   :  { %p2381_p6 = por %p2380_p5, %p2379_p4 }
   0xd   :  { %p2382_p7 = pnand %p2381_p6, %p2375_p3 }
   0xf   :  { %2385 = shalt.err (!%p2382_p7)
}
  0x10   :  { %s2413_s7 = smov 512   ;;  %s2414_s8 = smov 32  }
  0x11   :  { %28 = dma.hbm_to_vmem [thread:$0]  %s2966_s2, 8192, %s23_s22, [#allocation3], %s2413_s7, %s2413_s7, %s2414_s8  }
  0x12   :  { %s2415_s11 = smov [#allocation4]   ;;  %s2386_s15 = scalar_lea.hbm %s2968_s4, 2048 }
  0x13   :  { %s36_s12 = sshll.u32 %s2415_s11, 4  ;;  %p2387_p8 = scmp.ne.s32.totalorder %s2968_s4, %s2386_s15  ;;  %s37_s12 = int_to_ptr.vmem [resolvable:$true] %s36_s12 }
  0x14   :  { %p2390_p9 = scmp.lt.u32.totalorder %s2386_s15, %s2968_s4 }
  0x16   :  { %p2392_p10 = pnand %p2390_p9, %p2387_p8 }
  0x18   :  { %2395 = shalt.err (!%p2392_p10)
}
  0x19   :  { %s2396_s20 = scalar_lea.vmem %s37_s12, 2048  ;;  %p2401_p12 = scmp.lt.s32.totalorder %s37_s12, %s37_s12 }
  0x1a   :  { %p2397_p11 = scmp.ne.s32.totalorder %s37_s12, %s2396_s20  ;;  %p2402_p13 = scmp.lt.s32.totalorder %s2396_s20, %s2396_s20 }
  0x1c   :  { %p2403_p0 = por %p2402_p13, %p2401_p12 }
  0x1e   :  { %p2404_p1 = pnand %p2403_p0, %p2397_p11 }
  0x20   :  { %2407 = shalt.err (!%p2404_p1)
}
  0x21   :  { %s2416_s2 = smov 128   ;;  %s2417_s21 = smov 8  }
  0x22   :  { %42 = dma.hbm_to_vmem [thread:$0]  %s2968_s4, 2048, %s37_s12, [#allocation5], %s2416_s2, %s2416_s2, %s2417_s21  }
  0x23   :  { %2408 = dma.done.wait [#allocation3], 8192  }
  0x24   :  { %2409 = vsyncadd [#allocation3], 4294959104 }
  0x25   :  { %2410 = dma.done.wait [#allocation5], 2048  }
  0x26   :  { %2411 = vsyncadd [#allocation5], 4294965248  ;;  %v2418_v0 = vmov 0.0   ;;  %v2419_v1 = vmov 0   ;;  %v110_v2 = vld [vmem:[#allocation2 + $0x8] sm:$0xff]  ;;  %v112_v4 = vld [vmem:[#allocation2 + $0x18] sm:$0xff] }
  0x27   :  { %237 = vmatprep.mubr.f32.mxu0 %v2418_v0  ;;  %308 = vmatprep.mubr.f32.mxu1 %v2418_v0  ;;  %v114_v3 = vld [vmem:[#allocation2 + $0x28] sm:$0xff]  ;;  %v116_v6 = vld [vmem:[#allocation2 + $0x38] sm:$0xff]  ;;  %v109_v7 = vld [vmem:[#allocation2] sm:$0xff]  ;;  %vm2421_vm0 = vmmov 0  }
  0x28   :  { %2282 = vset.pattern.permute.xlu0 %v2419_v1  ;;  %2283 = vset.pattern.permute.xlu1 %v2419_v1  ;;  %v2483_v5 = vpack.c.bf16 %v114_v3, %v110_v2  ;;  %v113_v8 = vld [vmem:[#allocation2 + $0x20] sm:$0xff]  ;;  %v2485_v9 = vpack.c.bf16 %v116_v6, %v112_v4  ;;  %v111_v11 = vld [vmem:[#allocation2 + $0x10] sm:$0xff]  ;;  %v118_v13 = vld [vmem:[#allocation2 + $0x48] sm:$0xff] }
  0x29   :  { %v2487_v10 = vpack.c.bf16 %v113_v8, %v109_v7  ;;  %v115_v12 = vld [vmem:[#allocation2 + $0x30] sm:$0xff]  ;;  %v122_v15 = vld [vmem:[#allocation2 + $0x68] sm:$0xff]  ;;  %v120_v16 = vld [vmem:[#allocation2 + $0x58] sm:$0xff] }
  0x2a   :  { %1737 = vmatprep.subr.bf16.mxu0 %v2483_v5  ;;  %v2490_v14 = vpack.c.bf16 %v115_v12, %v111_v11  ;;  %v124_v17 = vld [vmem:[#allocation2 + $0x78] sm:$0xff]  ;;  %1769 = vmatprep.subr.bf16.mxu1 %v2485_v9  ;;  %v2494_v18 = vpack.c.bf16 %v122_v15, %v118_v13  ;;  %v117_v20 = vld [vmem:[#allocation2 + $0x40] sm:$0xff]  ;;  %v119_v22 = vld [vmem:[#allocation2 + $0x50] sm:$0xff] }
  0x2b   :  { %1739 = vmatpush1.bf16.msra.mxu0 %v2487_v10  ;;  %v2496_v19 = vpack.c.bf16 %v124_v17, %v120_v16  ;;  %v121_v21 = vld [vmem:[#allocation2 + $0x60] sm:$0xff]  ;;  %v123_v24 = vld [vmem:[#allocation2 + $0x70] sm:$0xff]  ;;  %v126_v25 = vld [vmem:[#allocation2 + $0x88] sm:$0xff] }
  0x2c   :  { %1771 = vmatpush1.bf16.msra.mxu1 %v2490_v14  ;;  %v2499_v23 = vpack.c.bf16 %v121_v21, %v117_v20  ;;  %v130_v26 = vld [vmem:[#allocation2 + $0xa8] sm:$0xff]  ;;  %1741 = vmatprep.subr.bf16.mxu0 %v2494_v18  ;;  %v2503_v27 = vpack.c.bf16 %v123_v24, %v119_v22  ;;  %v128_v29 = vld [vmem:[#allocation2 + $0x98] sm:$0xff]  ;;  %v125_v31 = vld [vmem:[#allocation2 + $0x80] sm:$0xff] }
  0x2d   :  { %1773 = vmatprep.subr.bf16.mxu1 %v2496_v19  ;;  %v2505_v28 = vpack.c.bf16 %v130_v26, %v126_v25  ;;  %v132_v30 = vld [vmem:[#allocation2 + $0xb8] sm:$0xff]  ;;  %v129_v33 = vld [vmem:[#allocation2 + $0xa0] sm:$0xff]  ;;  %v127_v34 = vld [vmem:[#allocation2 + $0x90] sm:$0xff] }
  0x2e   :  { %v2507_v32 = vpack.c.bf16 %v132_v30, %v128_v29  ;;  %v131_v35 = vld [vmem:[#allocation2 + $0xb0] sm:$0xff]  ;;  %v2510_v36 = vpack.c.bf16 %v129_v33, %v125_v31  ;;  %v134_v37 = vld [vmem:[#allocation2 + $0xc8] sm:$0xff]  ;;  %v136_v39 = vld [vmem:[#allocation2 + $0xd8] sm:$0xff] }
  0x2f   :  { %1743 = vmatpush1.bf16.msra.mxu0 %v2499_v23  ;;  %v138_v38 = vld [vmem:[#allocation2 + $0xe8] sm:$0xff]  ;;  %v2514_v40 = vpack.c.bf16 %v131_v35, %v127_v34  ;;  %v140_v42 = vld [vmem:[#allocation2 + $0xf8] sm:$0xff]  ;;  %v133_v43 = vld [vmem:[#allocation2 + $0xc0] sm:$0xff] }
  0x30   :  { %1775 = vmatpush1.bf16.msra.mxu1 %v2503_v27  ;;  %1745 = vmatprep.subr.bf16.mxu0 %v2505_v28  ;;  %v2516_v41 = vpack.c.bf16 %v138_v38, %v134_v37  ;;  %v137_v44 = vld [vmem:[#allocation2 + $0xe0] sm:$0xff]  ;;  %v2519_v45 = vpack.c.bf16 %v140_v42, %v136_v39  ;;  %v135_v46 = vld [vmem:[#allocation2 + $0xd0] sm:$0xff]  ;;  %v142_v48 = vld [vmem:[#allocation2 + $0x108] sm:$0xff] }
  0x31   :  { %1777 = vmatprep.subr.bf16.mxu1 %v2507_v32  ;;  %v139_v47 = vld [vmem:[#allocation2 + $0xf0] sm:$0xff]  ;;  %v146_v49 = vld [vmem:[#allocation2 + $0x128] sm:$0xff]  ;;  %v144_v50 = vld [vmem:[#allocation2 + $0x118] sm:$0xff]  ;;  %v2522_v52 = vpack.c.bf16 %v137_v44, %v133_v43 }
  0x32   :  { %v148_v51 = vld [vmem:[#allocation2 + $0x138] sm:$0xff]  ;;  %v2526_v53 = vpack.c.bf16 %v139_v47, %v135_v46  ;;  %v2528_v54 = vpack.c.bf16 %v146_v49, %v142_v48  ;;  %v141_v55 = vld [vmem:[#allocation2 + $0x100] sm:$0xff]  ;;  %v143_v57 = vld [vmem:[#allocation2 + $0x110] sm:$0xff] }
  0x33   :  { %1747 = vmatpush1.bf16.msra.mxu0 %v2510_v36  ;;  %v145_v56 = vld [vmem:[#allocation2 + $0x120] sm:$0xff]  ;;  %v2531_v58 = vpack.c.bf16 %v148_v51, %v144_v50  ;;  %v147_v59 = vld [vmem:[#allocation2 + $0x130] sm:$0xff]  ;;  %v150_v60 = vld [vmem:[#allocation2 + $0x148] sm:$0xff] }
  0x34   :  { %1779 = vmatpush1.bf16.msra.mxu1 %v2514_v40  ;;  %1749 = vmatprep.subr.bf16.mxu0 %v2516_v41  ;;  %v154_v61 = vld [vmem:[#allocation2 + $0x168] sm:$0xff]  ;;  %v152_v62 = vld [vmem:[#allocation2 + $0x158] sm:$0xff]  ;;  %v2534_v1 = vpack.c.bf16 %v145_v56, %v141_v55  ;;  %v2538_v2 = vpack.c.bf16 %v147_v59, %v143_v57  ;;  %v149_v4 = vld [vmem:[#allocation2 + $0x140] sm:$0xff]  ;;  %v60_v56 = vlaneseq }
  0x35   :  { %1781 = vmatprep.subr.bf16.mxu1 %v2519_v45  ;;  %v156_v63 = vld [vmem:[#allocation2 + $0x178] sm:$0xff]  ;;  %v2540_v3 = vpack.c.bf16 %v154_v61, %v150_v60  ;;  %v153_v6 = vld [vmem:[#allocation2 + $0x160] sm:$0xff]  ;;  %v151_v7 = vld [vmem:[#allocation2 + $0x150] sm:$0xff] }
  0x36   :  { %v2543_v8 = vpack.c.bf16 %v156_v63, %v152_v62  ;;  %v155_v11 = vld [vmem:[#allocation2 + $0x170] sm:$0xff]  ;;  %v158_v12 = vld [vmem:[#allocation2 + $0x188] sm:$0xff]  ;;  %v160_v15 = vld [vmem:[#allocation2 + $0x198] sm:$0xff]  ;;  %v2546_v17 = vpack.c.bf16 %v153_v6, %v149_v4  ;;  %v61_v57 = vshrl.u32 %v60_v56, 7 }
  0x37   :  { %1751 = vmatpush1.bf16.msra.mxu0 %v2522_v52  ;;  %v162_v13 = vld [vmem:[#allocation2 + $0x1a8] sm:$0xff]  ;;  %v164_v16 = vld [vmem:[#allocation2 + $0x1b8] sm:$0xff]  ;;  %v157_v20 = vld [vmem:[#allocation2 + $0x180] sm:$0xff]  ;;  %v2550_v21 = vpack.c.bf16 %v155_v11, %v151_v7 }
  0x38   :  { %1783 = vmatpush1.bf16.msra.mxu1 %v2526_v53  ;;  %1753 = vmatprep.subr.bf16.mxu0 %v2528_v54  ;;  %v2552_v22 = vpack.c.bf16 %v162_v13, %v158_v12  ;;  %v161_v24 = vld [vmem:[#allocation2 + $0x1a0] sm:$0xff]  ;;  %v159_v25 = vld [vmem:[#allocation2 + $0x190] sm:$0xff]  ;;  %v2558_v29 = vpack.c.bf16 %v164_v16, %v160_v15  ;;  %v166_v31 = vld [vmem:[#allocation2 + $0x1c8] sm:$0xff]  ;;  %v62_v59 = vsub.s32 0, %v61_v57  ;;  %v66_v60 = vsub.s32 1, %v61_v57 }
  0x39   :  { %1785 = vmatprep.subr.bf16.mxu1 %v2531_v58  ;;  %v53_v26 = vld [vmem:[%s2964_s0] sm:$0xff]  ;;  %v163_v30 = vld [vmem:[#allocation2 + $0x1b0] sm:$0xff]  ;;  %v170_v33 = vld [vmem:[#allocation2 + $0x1e8] sm:$0xff]  ;;  %v2564_v38 = vpack.c.bf16 %v161_v24, %v157_v20  ;;  %v70_v62 = vsub.s32 2, %v61_v57  ;;  %v74_v11 = vsub.s32 3, %v61_v57 }
  0x3a   :  { %56 = vperm.xlu0 %2282, %v53_v26   ;;  %v168_v34 = vld [vmem:[#allocation2 + $0x1d8] sm:$0xff]  ;;  %v337_v37 = vld [vmem:[%s2964_s0 + $0x8] sm:$0xff]  ;;  %v2568_v39 = vpack.c.bf16 %v163_v30, %v159_v25  ;;  %v2570_v42 = vpack.c.bf16 %v170_v33, %v166_v31  ;;  %v165_v43 = vld [vmem:[#allocation2 + $0x1c0] sm:$0xff] }
  0x3b   :  { %1755 = vmatpush1.bf16.msra.mxu0 %v2534_v1  ;;  %v172_v35 = vld [vmem:[#allocation2 + $0x1f8] sm:$0xff]  ;;  %v169_v44 = vld [vmem:[#allocation2 + $0x1e0] sm:$0xff]  ;;  %v167_v47 = vld [vmem:[#allocation2 + $0x1d0] sm:$0xff] }
  0x3c   :  { %1787 = vmatpush1.bf16.msra.mxu1 %v2538_v2  ;;  %1757 = vmatprep.subr.bf16.mxu0 %v2540_v3  ;;  %v2573_v46 = vpack.c.bf16 %v172_v35, %v168_v34  ;;  %v171_v48 = vld [vmem:[#allocation2 + $0x1f0] sm:$0xff]  ;;  %v871_v49 = vld [vmem:[%s2964_s0 + $0x20] sm:$0xff]  ;;  %v2579_v50 = vpack.c.bf16 %v169_v44, %v165_v43 }
  0x3d   :  { %1789 = vmatprep.subr.bf16.mxu1 %v2543_v8  ;;  %v2583_v51 = vpack.c.bf16 %v171_v48, %v167_v47  ;;  %v1227_v55 = vld [vmem:[%s2964_s0 + $0x30] sm:$0xff]  ;;  %v51_v61 = vld [vmem:[%s2965_s1] sm:$0xf] }
  0x3e   :  { %340 = vperm.xlu0 %2282, %v337_v37   ;;  %v2632_v63 = vrot.slane %v51_v61, %v62_v59  ;;  %v2634_v4 = vrot.slane %v51_v61, %v66_v60  ;;  %v52_v6 = vld [vmem:[%s2967_s3] sm:$0xf]  ;;  %v2639_v12 = vrot.slane %v51_v61, %v70_v62  ;;  %v2647_v24 = vrot.slane %v51_v61, %v74_v11 }
  0x3f   :  { %1759 = vmatpush1.bf16.msra.mxu0 %v2546_v17  ;;  %v2642_v15 = vrot.slane %v52_v6, %v62_v59  ;;  %v2645_v20 = vrot.slane %v52_v6, %v66_v60  ;;  %v2651_v30 = vrot.slane %v52_v6, %v70_v62  ;;  %v2656_v47 = vrot.slane %v52_v6, %v74_v11 }
  0x40   :  { %1791 = vmatpush1.bf16.msra.mxu1 %v2550_v21  ;;  %1761 = vmatprep.subr.bf16.mxu0 %v2552_v22 }
  0x41   :  { %1793 = vmatprep.subr.bf16.mxu1 %v2558_v29 }
  0x42   :  { %874 = vperm.xlu0 %2282, %v871_v49  }
  0x43   :  { %1763 = vmatpush1.bf16.msra.mxu0 %v2564_v38 }
  0x44   :  { %1795 = vmatpush1.bf16.msra.mxu1 %v2568_v39  ;;  %1765 = vmatprep.subr.bf16.mxu0 %v2570_v42 }
  0x45   :  { %1797 = vmatprep.subr.bf16.mxu1 %v2573_v46 }
  0x46   :  { %1230 = vperm.xlu0 %2282, %v1227_v55  }
  0x47   :  { %1767 = vmatpush1.bf16.msra.mxu0 %v2579_v50 }
  0x48   :  { %1799 = vmatpush1.bf16.msra.mxu1 %v2583_v51  ;;  %1801 = vmatprep.subr.bf16.mxu0 %v2483_v5 }
  0x49   :  { %1833 = vmatprep.subr.bf16.mxu1 %v2485_v9 }
  0x4a   :  { %238 = vmatmul.mubr.f32.vlgmr.msra.gmra.mrb[0].mxu0 %v2418_v0 }
  0x4b   :  { %309 = vmatmul.mubr.f32.vlgmr.msra.gmra.mrb[0].mxu1 %v2418_v0  ;;  %1803 = vmatpush1.bf16.msra.mxu0 %v2487_v10 }
  0x4c   :  { %1835 = vmatpush1.bf16.msra.mxu1 %v2490_v14  ;;  %1805 = vmatprep.subr.bf16.mxu0 %v2494_v18 }
  0x4d   :  { %1837 = vmatprep.subr.bf16.mxu1 %v2496_v19  ;;  %415 = vmatprep.mubr.f32.mxu0 %v2418_v0 }
  0x4e   :  { %486 = vmatprep.mubr.f32.mxu1 %v2418_v0 }
  0x4f   :  { %1807 = vmatpush1.bf16.msra.mxu0 %v2499_v23 }
  0x50   :  { %1839 = vmatpush1.bf16.msra.mxu1 %v2503_v27  ;;  %1809 = vmatprep.subr.bf16.mxu0 %v2505_v28 }
  0x51   :  { %1841 = vmatprep.subr.bf16.mxu1 %v2507_v32 }
  0x53   :  { %1811 = vmatpush1.bf16.msra.mxu0 %v2510_v36 }
  0x54   :  { %1843 = vmatpush1.bf16.msra.mxu1 %v2514_v40  ;;  %1813 = vmatprep.subr.bf16.mxu0 %v2516_v41 }
  0x55   :  { %1845 = vmatprep.subr.bf16.mxu1 %v2519_v45 }
  0x57   :  { %1815 = vmatpush1.bf16.msra.mxu0 %v2522_v52 }
  0x58   :  { %1847 = vmatpush1.bf16.msra.mxu1 %v2526_v53  ;;  %1817 = vmatprep.subr.bf16.mxu0 %v2528_v54 }
  0x59   :  { %1849 = vmatprep.subr.bf16.mxu1 %v2531_v58 }
  0x5b   :  { %1819 = vmatpush1.bf16.msra.mxu0 %v2534_v1 }
  0x5c   :  { %1851 = vmatpush1.bf16.msra.mxu1 %v2538_v2  ;;  %1821 = vmatprep.subr.bf16.mxu0 %v2540_v3 }
  0x5d   :  { %1853 = vmatprep.subr.bf16.mxu1 %v2543_v8 }
  0x5f   :  { %1823 = vmatpush1.bf16.msra.mxu0 %v2546_v17 }
  0x60   :  { %1855 = vmatpush1.bf16.msra.mxu1 %v2550_v21  ;;  %1825 = vmatprep.subr.bf16.mxu0 %v2552_v22 }
  0x61   :  { %1857 = vmatprep.subr.bf16.mxu1 %v2558_v29 }
  0x63   :  { %1827 = vmatpush1.bf16.msra.mxu0 %v2564_v38 }
  0x64   :  { %1859 = vmatpush1.bf16.msra.mxu1 %v2568_v39  ;;  %1829 = vmatprep.subr.bf16.mxu0 %v2570_v42 }
  0x65   :  { %1861 = vmatprep.subr.bf16.mxu1 %v2573_v46 }
  0x67   :  { %1831 = vmatpush1.bf16.msra.mxu0 %v2579_v50 }
  0x68   :  { %1863 = vmatpush1.bf16.msra.mxu1 %v2583_v51  ;;  %1865 = vmatprep.subr.bf16.mxu0 %v2483_v5 }
  0x69   :  { %1897 = vmatprep.subr.bf16.mxu1 %v2485_v9 }
  0xb9   :  { %v57_v7 = vpop.permute.xlu0 %56 }
  0xba   :  { %v80_v13 = vmul.f32 %v2632_v63, %v57_v7  ;;  %v81_v16 = vmul.f32 %v2634_v4, %v57_v7  ;;  %v82_v26 = vmul.f32 %v2639_v12, %v57_v7  ;;  %v83_v44 = vmul.f32 %v2647_v24, %v57_v7 }
  0xbc   :  { %v105_v25 = vadd.f32 %v2642_v15, %v80_v13  ;;  %v106_v31 = vadd.f32 %v2645_v20, %v81_v16  ;;  %v107_v35 = vadd.f32 %v2651_v30, %v82_v26  ;;  %v108_v59 = vadd.f32 %v2656_v47, %v83_v44 }
 0x11d   :  { %v239_v33 = vpop.f32.mrb[0].mxu0 }
 0x11e   :  { %v315_v34 = vadd.f32 %v239_v33, %v105_v25  ;;  %v310_v37 = vpop.f32.mrb[0].mxu1  ;;  %v241_v43 = vpop.f32.mrb[1].mxu0 }
 0x11f   :  { %v316_v48 = vadd.f32 %v241_v43, %v106_v31  ;;  %v312_v49 = vpop.f32.mrb[1].mxu1  ;;  %v317_v57 = vadd.f32 %v310_v37, %v107_v35 }
 0x120   :  { %v319_v55 = vmul.f32 0.5, %v315_v34  ;;  %v318_v60 = vadd.f32 %v312_v49, %v108_v59  ;;  %v693_v49 = vld [vmem:[%s2964_s0 + $0x18] sm:$0xff] }
 0x121   :  { %v323_v56 = vmul.f32 0.5, %v316_v48  ;;  %v515_v48 = vld [vmem:[%s2964_s0 + $0x10] sm:$0xff] }
 0x122   :  { %2284 = vtanh.f32 %v319_v55  ;;  %v328_v61 = vmul.f32 0.5, %v318_v60  ;;  %518 = vperm.xlu1 %2283, %v515_v48   ;;  %v1049_v55 = vld [vmem:[%s2964_s0 + $0x28] sm:$0xff] }
 0x123   :  { %2286 = vtanh.f32 %v323_v56  ;;  %v1405_v56 = vld [vmem:[%s2964_s0 + $0x38] sm:$0xff] }
 0x124   :  { %2288 = vtanh.f32 %v317_v57  ;;  %v341_v57 = vpop.permute.xlu0 %340 }
 0x125   :  { %2290 = vtanh.f32 %v328_v61  ;;  %v343_v59 = vmul.f32 %v341_v57, %v2632_v63  ;;  %v344_v60 = vmul.f32 %v341_v57, %v2634_v4 }
 0x126   :  { %696 = vperm.xlu1 %2283, %v693_v49  }
 0x127   :  { %v347_v61 = vadd.f32 %v343_v59, %v2642_v15 }
 0x12a   :  { %1052 = vperm.xlu1 %2283, %v1049_v55  }
 0x12c   :  { %v2285_v62 = vpop.eup %2284 }
 0x12d   :  { %v2287_v13 = vpop.eup %2286  ;;  %v321_v16 = vmul.f32 0.5, %v2285_v62  ;;  %v345_v62 = vmul.f32 %v341_v57, %v2639_v12 }
 0x12e   :  { %v325_v25 = vmul.f32 0.5, %v2287_v13  ;;  %v2289_v6 = vpop.eup %2288  ;;  %1408 = vperm.xlu1 %2283, %v1405_v56  }
 0x12f   :  { %v322_v7 = vadd.f32 0.5, %v321_v16  ;;  %v2291_v34 = vpop.eup %2290 }
 0x130   :  { %v326_v11 = vadd.f32 0.5, %v325_v25  ;;  %v330_v35 = vmul.f32 0.5, %v2291_v34  ;;  %v348_v25 = vadd.f32 %v344_v60, %v2645_v20  ;;  %v349_v34 = vadd.f32 %v345_v62, %v2651_v30 }
 0x131   :  { %v333_v26 = vmul.f32 %v2289_v6, %v322_v7 }
 0x132   :  { %v332_v31 = vmul.f32 0.0, %v326_v11  ;;  %v331_v37 = vadd.f32 0.5, %v330_v35  ;;  %v346_v35 = vmul.f32 %v341_v57, %v2647_v24 }
 0x134   :  { %v2659_v33 = vadd.f32 %v333_v26, %v332_v31 }
 0x136   :  { %2292 = vtanh.f32 %v2659_v33 }
 0x140   :  { %v2293_v43 = vpop.eup %2292 }
 0x141   :  { %v336_v44 = vmul.f32 %v2293_v43, %v331_v37 }
 0x143   :  { %416 = vmatmul.mubr.f32.vlgmr.msra.gmra.mrb[2].mxu0 %v336_v44  ;;  %487 = vmatmul.mubr.f32.vlgmr.msra.gmra.mrb[2].mxu1 %v336_v44  ;;  %v350_v44 = vadd.f32 %v346_v35, %v2656_v47 }
 0x144   :  { %1867 = vmatpush1.bf16.msra.mxu0 %v2487_v10  ;;  %1899 = vmatpush1.bf16.msra.mxu1 %v2490_v14 }
 0x145   :  { %1869 = vmatprep.subr.bf16.mxu0 %v2494_v18  ;;  %1901 = vmatprep.subr.bf16.mxu1 %v2496_v19 }
 0x146   :  { %593 = vmatprep.mubr.f32.mxu0 %v2418_v0  ;;  %664 = vmatprep.mubr.f32.mxu1 %v2418_v0 }
 0x148   :  { %1871 = vmatpush1.bf16.msra.mxu0 %v2499_v23  ;;  %1903 = vmatpush1.bf16.msra.mxu1 %v2503_v27 }
 0x149   :  { %1873 = vmatprep.subr.bf16.mxu0 %v2505_v28  ;;  %1905 = vmatprep.subr.bf16.mxu1 %v2507_v32 }
 0x14c   :  { %1875 = vmatpush1.bf16.msra.mxu0 %v2510_v36  ;;  %1907 = vmatpush1.bf16.msra.mxu1 %v2514_v40 }
 0x14d   :  { %1877 = vmatprep.subr.bf16.mxu0 %v2516_v41  ;;  %1909 = vmatprep.subr.bf16.mxu1 %v2519_v45 }
 0x150   :  { %1879 = vmatpush1.bf16.msra.mxu0 %v2522_v52  ;;  %1911 = vmatpush1.bf16.msra.mxu1 %v2526_v53 }
 0x151   :  { %1881 = vmatprep.subr.bf16.mxu0 %v2528_v54  ;;  %1913 = vmatprep.subr.bf16.mxu1 %v2531_v58 }
 0x154   :  { %1883 = vmatpush1.bf16.msra.mxu0 %v2534_v1  ;;  %1915 = vmatpush1.bf16.msra.mxu1 %v2538_v2 }
 0x155   :  { %1885 = vmatprep.subr.bf16.mxu0 %v2540_v3  ;;  %1917 = vmatprep.subr.bf16.mxu1 %v2543_v8 }
 0x158   :  { %1887 = vmatpush1.bf16.msra.mxu0 %v2546_v17  ;;  %1919 = vmatpush1.bf16.msra.mxu1 %v2550_v21 }
 0x159   :  { %1889 = vmatprep.subr.bf16.mxu0 %v2552_v22  ;;  %1921 = vmatprep.subr.bf16.mxu1 %v2558_v29 }
 0x15c   :  { %1891 = vmatpush1.bf16.msra.mxu0 %v2564_v38  ;;  %1923 = vmatpush1.bf16.msra.mxu1 %v2568_v39 }
 0x15d   :  { %1893 = vmatprep.subr.bf16.mxu0 %v2570_v42  ;;  %1925 = vmatprep.subr.bf16.mxu1 %v2573_v46 }
 0x160   :  { %1895 = vmatpush1.bf16.msra.mxu0 %v2579_v50  ;;  %1927 = vmatpush1.bf16.msra.mxu1 %v2583_v51 }
 0x161   :  { %1929 = vmatprep.subr.bf16.mxu0 %v2483_v5  ;;  %1961 = vmatprep.subr.bf16.mxu1 %v2485_v9 }
 0x216   :  { %v417_v13 = vpop.f32.mrb[2].mxu0  ;;  %v488_v16 = vpop.f32.mrb[2].mxu1 }
 0x217   :  { %v493_v7 = vadd.f32 %v417_v13, %v347_v61  ;;  %v419_v6 = vpop.f32.mrb[3].mxu0  ;;  %v490_v11 = vpop.f32.mrb[3].mxu1  ;;  %v495_v43 = vadd.f32 %v488_v16, %v349_v34 }
 0x218   :  { %v494_v26 = vadd.f32 %v419_v6, %v348_v25  ;;  %v496_v48 = vadd.f32 %v490_v11, %v350_v44 }
 0x219   :  { %v497_v31 = vmul.f32 0.5, %v493_v7 }
 0x21a   :  { %v501_v37 = vmul.f32 0.5, %v494_v26  ;;  %v506_v49 = vmul.f32 0.5, %v496_v48 }
 0x21b   :  { %2294 = vtanh.f32 %v497_v31 }
 0x21c   :  { %2296 = vtanh.f32 %v501_v37 }
 0x21d   :  { %2298 = vtanh.f32 %v495_v43 }
 0x21e   :  { %2300 = vtanh.f32 %v506_v49 }
 0x225   :  { %v2295_v55 = vpop.eup %2294 }
 0x226   :  { %v2297_v56 = vpop.eup %2296  ;;  %v499_v59 = vmul.f32 0.5, %v2295_v55 }
 0x227   :  { %v503_v60 = vmul.f32 0.5, %v2297_v56  ;;  %v2299_v13 = vpop.eup %2298 }
 0x228   :  { %v500_v61 = vadd.f32 0.5, %v499_v59  ;;  %v2301_v16 = vpop.eup %2300 }
 0x229   :  { %v504_v25 = vadd.f32 0.5, %v503_v60  ;;  %v508_v6 = vmul.f32 0.5, %v2301_v16 }
 0x22a   :  { %v511_v62 = vmul.f32 %v2299_v13, %v500_v61 }
 0x22b   :  { %v510_v57 = vmul.f32 %v504_v25, %v2659_v33  ;;  %v509_v26 = vadd.f32 0.5, %v508_v6  ;;  %v519_v33 = vpop.permute.xlu1 %518 }
 0x22c   :  { %v521_v34 = vmul.f32 %v519_v33, %v2632_v63  ;;  %v522_v35 = vmul.f32 %v519_v33, %v2634_v4  ;;  %v523_v43 = vmul.f32 %v519_v33, %v2639_v12  ;;  %v524_v60 = vmul.f32 %v519_v33, %v2647_v24 }
 0x22d   :  { %v2717_v7 = vadd.f32 %v511_v62, %v510_v57 }
 0x22e   :  { %v525_v37 = vadd.f32 %v521_v34, %v2642_v15  ;;  %v526_v44 = vadd.f32 %v522_v35, %v2645_v20  ;;  %v527_v56 = vadd.f32 %v523_v43, %v2651_v30  ;;  %v528_v16 = vadd.f32 %v524_v60, %v2656_v47 }
 0x22f   :  { %2302 = vtanh.f32 %v2717_v7 }
 0x239   :  { %v2303_v11 = vpop.eup %2302 }
 0x23a   :  { %v514_v31 = vmul.f32 %v2303_v11, %v509_v26 }
 0x23c   :  { %594 = vmatmul.mubr.f32.vlgmr.msra.gmra.mrb[4].mxu0 %v514_v31  ;;  %665 = vmatmul.mubr.f32.vlgmr.msra.gmra.mrb[4].mxu1 %v514_v31 }
 0x23d   :  { %1931 = vmatpush1.bf16.msra.mxu0 %v2487_v10  ;;  %1963 = vmatpush1.bf16.msra.mxu1 %v2490_v14 }
 0x23e   :  { %1933 = vmatprep.subr.bf16.mxu0 %v2494_v18  ;;  %1965 = vmatprep.subr.bf16.mxu1 %v2496_v19 }
 0x23f   :  { %771 = vmatprep.mubr.f32.mxu0 %v2418_v0  ;;  %842 = vmatprep.mubr.f32.mxu1 %v2418_v0 }
 0x241   :  { %1935 = vmatpush1.bf16.msra.mxu0 %v2499_v23  ;;  %1967 = vmatpush1.bf16.msra.mxu1 %v2503_v27 }
 0x242   :  { %1937 = vmatprep.subr.bf16.mxu0 %v2505_v28  ;;  %1969 = vmatprep.subr.bf16.mxu1 %v2507_v32 }
 0x245   :  { %1939 = vmatpush1.bf16.msra.mxu0 %v2510_v36  ;;  %1971 = vmatpush1.bf16.msra.mxu1 %v2514_v40 }
 0x246   :  { %1941 = vmatprep.subr.bf16.mxu0 %v2516_v41  ;;  %1973 = vmatprep.subr.bf16.mxu1 %v2519_v45 }
 0x249   :  { %1943 = vmatpush1.bf16.msra.mxu0 %v2522_v52  ;;  %1975 = vmatpush1.bf16.msra.mxu1 %v2526_v53 }
 0x24a   :  { %1945 = vmatprep.subr.bf16.mxu0 %v2528_v54  ;;  %1977 = vmatprep.subr.bf16.mxu1 %v2531_v58 }
 0x24d   :  { %1947 = vmatpush1.bf16.msra.mxu0 %v2534_v1  ;;  %1979 = vmatpush1.bf16.msra.mxu1 %v2538_v2 }
 0x24e   :  { %1949 = vmatprep.subr.bf16.mxu0 %v2540_v3  ;;  %1981 = vmatprep.subr.bf16.mxu1 %v2543_v8 }
 0x251   :  { %1951 = vmatpush1.bf16.msra.mxu0 %v2546_v17  ;;  %1983 = vmatpush1.bf16.msra.mxu1 %v2550_v21 }
 0x252   :  { %1953 = vmatprep.subr.bf16.mxu0 %v2552_v22  ;;  %1985 = vmatprep.subr.bf16.mxu1 %v2558_v29 }
 0x255   :  { %1955 = vmatpush1.bf16.msra.mxu0 %v2564_v38  ;;  %1987 = vmatpush1.bf16.msra.mxu1 %v2568_v39 }
 0x256   :  { %1957 = vmatprep.subr.bf16.mxu0 %v2570_v42  ;;  %1989 = vmatprep.subr.bf16.mxu1 %v2573_v46 }
 0x259   :  { %1959 = vmatpush1.bf16.msra.mxu0 %v2579_v50  ;;  %1991 = vmatpush1.bf16.msra.mxu1 %v2583_v51 }
 0x25a   :  { %1993 = vmatprep.subr.bf16.mxu0 %v2483_v5  ;;  %2025 = vmatprep.subr.bf16.mxu1 %v2485_v9 }
 0x30f   :  { %v595_v48 = vpop.f32.mrb[4].mxu0  ;;  %v666_v49 = vpop.f32.mrb[4].mxu1 }
 0x310   :  { %v671_v55 = vadd.f32 %v595_v48, %v525_v37  ;;  %v597_v59 = vpop.f32.mrb[5].mxu0  ;;  %v668_v61 = vpop.f32.mrb[5].mxu1  ;;  %v673_v57 = vadd.f32 %v666_v49, %v527_v56 }
 0x311   :  { %v672_v13 = vadd.f32 %v597_v59, %v526_v44  ;;  %v674_v6 = vadd.f32 %v668_v61, %v528_v16 }
 0x312   :  { %v675_v25 = vmul.f32 0.5, %v671_v55 }
 0x313   :  { %v679_v62 = vmul.f32 0.5, %v672_v13  ;;  %v684_v26 = vmul.f32 0.5, %v674_v6 }
 0x314   :  { %2304 = vtanh.f32 %v675_v25 }
 0x315   :  { %2306 = vtanh.f32 %v679_v62 }
 0x316   :  { %2308 = vtanh.f32 %v673_v57 }
 0x317   :  { %2310 = vtanh.f32 %v684_v26 }
 0x31e   :  { %v2305_v11 = vpop.eup %2304 }
 0x31f   :  { %v2307_v31 = vpop.eup %2306  ;;  %v677_v34 = vmul.f32 0.5, %v2305_v11 }
 0x320   :  { %v681_v35 = vmul.f32 0.5, %v2307_v31  ;;  %v2309_v43 = vpop.eup %2308 }
 0x321   :  { %v678_v37 = vadd.f32 0.5, %v677_v34  ;;  %v2311_v49 = vpop.eup %2310 }
 0x322   :  { %v682_v33 = vadd.f32 0.5, %v681_v35  ;;  %v686_v56 = vmul.f32 0.5, %v2311_v49 }
 0x323   :  { %v689_v48 = vmul.f32 %v2309_v43, %v678_v37 }
 0x324   :  { %v688_v44 = vmul.f32 %v682_v33, %v2717_v7  ;;  %v687_v59 = vadd.f32 0.5, %v686_v56  ;;  %v697_v7 = vpop.permute.xlu1 %696 }
 0x325   :  { %v699_v13 = vmul.f32 %v697_v7, %v2632_v63  ;;  %v700_v25 = vmul.f32 %v697_v7, %v2634_v4  ;;  %v701_v57 = vmul.f32 %v697_v7, %v2639_v12  ;;  %v702_v33 = vmul.f32 %v697_v7, %v2647_v24 }
 0x326   :  { %v2763_v55 = vadd.f32 %v689_v48, %v688_v44 }
 0x327   :  { %v703_v62 = vadd.f32 %v699_v13, %v2642_v15  ;;  %v704_v26 = vadd.f32 %v700_v25, %v2645_v20  ;;  %v705_v43 = vadd.f32 %v701_v57, %v2651_v30  ;;  %v706_v49 = vadd.f32 %v702_v33, %v2656_v47 }
 0x328   :  { %2312 = vtanh.f32 %v2763_v55 }
 0x332   :  { %v2313_v60 = vpop.eup %2312 }
 0x333   :  { %v692_v61 = vmul.f32 %v2313_v60, %v687_v59 }
 0x335   :  { %772 = vmatmul.mubr.f32.vlgmr.msra.gmra.mrb[6].mxu0 %v692_v61  ;;  %843 = vmatmul.mubr.f32.vlgmr.msra.gmra.mrb[6].mxu1 %v692_v61 }
 0x336   :  { %1995 = vmatpush1.bf16.msra.mxu0 %v2487_v10  ;;  %2027 = vmatpush1.bf16.msra.mxu1 %v2490_v14 }
 0x337   :  { %1997 = vmatprep.subr.bf16.mxu0 %v2494_v18  ;;  %2029 = vmatprep.subr.bf16.mxu1 %v2496_v19 }
 0x338   :  { %949 = vmatprep.mubr.f32.mxu0 %v2418_v0  ;;  %1020 = vmatprep.mubr.f32.mxu1 %v2418_v0 }
 0x33a   :  { %1999 = vmatpush1.bf16.msra.mxu0 %v2499_v23  ;;  %2031 = vmatpush1.bf16.msra.mxu1 %v2503_v27 }
 0x33b   :  { %2001 = vmatprep.subr.bf16.mxu0 %v2505_v28  ;;  %2033 = vmatprep.subr.bf16.mxu1 %v2507_v32 }
 0x33e   :  { %2003 = vmatpush1.bf16.msra.mxu0 %v2510_v36  ;;  %2035 = vmatpush1.bf16.msra.mxu1 %v2514_v40 }
 0x33f   :  { %2005 = vmatprep.subr.bf16.mxu0 %v2516_v41  ;;  %2037 = vmatprep.subr.bf16.mxu1 %v2519_v45 }
 0x342   :  { %2007 = vmatpush1.bf16.msra.mxu0 %v2522_v52  ;;  %2039 = vmatpush1.bf16.msra.mxu1 %v2526_v53 }
 0x343   :  { %2009 = vmatprep.subr.bf16.mxu0 %v2528_v54  ;;  %2041 = vmatprep.subr.bf16.mxu1 %v2531_v58 }
 0x346   :  { %2011 = vmatpush1.bf16.msra.mxu0 %v2534_v1  ;;  %2043 = vmatpush1.bf16.msra.mxu1 %v2538_v2 }
 0x347   :  { %2013 = vmatprep.subr.bf16.mxu0 %v2540_v3  ;;  %2045 = vmatprep.subr.bf16.mxu1 %v2543_v8 }
 0x34a   :  { %2015 = vmatpush1.bf16.msra.mxu0 %v2546_v17  ;;  %2047 = vmatpush1.bf16.msra.mxu1 %v2550_v21 }
 0x34b   :  { %2017 = vmatprep.subr.bf16.mxu0 %v2552_v22  ;;  %2049 = vmatprep.subr.bf16.mxu1 %v2558_v29 }
 0x34e   :  { %2019 = vmatpush1.bf16.msra.mxu0 %v2564_v38  ;;  %2051 = vmatpush1.bf16.msra.mxu1 %v2568_v39 }
 0x34f   :  { %2021 = vmatprep.subr.bf16.mxu0 %v2570_v42  ;;  %2053 = vmatprep.subr.bf16.mxu1 %v2573_v46 }
 0x352   :  { %2023 = vmatpush1.bf16.msra.mxu0 %v2579_v50  ;;  %2055 = vmatpush1.bf16.msra.mxu1 %v2583_v51 }
 0x353   :  { %2057 = vmatprep.subr.bf16.mxu0 %v2483_v5  ;;  %2089 = vmatprep.subr.bf16.mxu1 %v2485_v9 }
 0x408   :  { %v773_v16 = vpop.f32.mrb[6].mxu0  ;;  %v844_v6 = vpop.f32.mrb[6].mxu1 }
 0x409   :  { %v849_v11 = vadd.f32 %v773_v16, %v703_v62  ;;  %v775_v31 = vpop.f32.mrb[7].mxu0  ;;  %v846_v34 = vpop.f32.mrb[7].mxu1  ;;  %v851_v44 = vadd.f32 %v844_v6, %v705_v43 }
 0x40a   :  { %v850_v35 = vadd.f32 %v775_v31, %v704_v26  ;;  %v852_v56 = vadd.f32 %v846_v34, %v706_v49 }
 0x40b   :  { %v853_v37 = vmul.f32 0.5, %v849_v11 }
 0x40c   :  { %v857_v48 = vmul.f32 0.5, %v850_v35  ;;  %v862_v59 = vmul.f32 0.5, %v852_v56 }
 0x40d   :  { %2314 = vtanh.f32 %v853_v37 }
 0x40e   :  { %2316 = vtanh.f32 %v857_v48 }
 0x40f   :  { %2318 = vtanh.f32 %v851_v44 }
 0x410   :  { %2320 = vtanh.f32 %v862_v59 }
 0x417   :  { %v2315_v60 = vpop.eup %2314 }
 0x418   :  { %v2317_v61 = vpop.eup %2316  ;;  %v855_v13 = vmul.f32 0.5, %v2315_v60 }
 0x419   :  { %v859_v25 = vmul.f32 0.5, %v2317_v61  ;;  %v2319_v16 = vpop.eup %2318 }
 0x41a   :  { %v856_v62 = vadd.f32 0.5, %v855_v13  ;;  %v2321_v6 = vpop.eup %2320 }
 0x41b   :  { %v860_v26 = vadd.f32 0.5, %v859_v25  ;;  %v864_v31 = vmul.f32 0.5, %v2321_v6 }
 0x41c   :  { %v867_v57 = vmul.f32 %v2319_v16, %v856_v62 }
 0x41d   :  { %v866_v7 = vmul.f32 %v860_v26, %v2763_v55  ;;  %v865_v35 = vadd.f32 0.5, %v864_v31  ;;  %v875_v55 = vpop.permute.xlu0 %874 }
 0x41e   :  { %v877_v43 = vmul.f32 %v875_v55, %v2632_v63  ;;  %v878_v33 = vmul.f32 %v875_v55, %v2634_v4  ;;  %v879_v44 = vmul.f32 %v875_v55, %v2639_v12  ;;  %v880_v26 = vmul.f32 %v875_v55, %v2647_v24 }
 0x41f   :  { %v2809_v11 = vadd.f32 %v867_v57, %v866_v7 }
 0x420   :  { %v881_v48 = vadd.f32 %v877_v43, %v2642_v15  ;;  %v882_v59 = vadd.f32 %v878_v33, %v2645_v20  ;;  %v883_v16 = vadd.f32 %v879_v44, %v2651_v30  ;;  %v884_v6 = vadd.f32 %v880_v26, %v2656_v47 }
 0x421   :  { %2322 = vtanh.f32 %v2809_v11 }
 0x42b   :  { %v2323_v34 = vpop.eup %2322 }
 0x42c   :  { %v870_v37 = vmul.f32 %v2323_v34, %v865_v35 }
 0x42e   :  { %950 = vmatmul.mubr.f32.vlgmr.msra.gmra.mrb[8].mxu0 %v870_v37  ;;  %1021 = vmatmul.mubr.f32.vlgmr.msra.gmra.mrb[8].mxu1 %v870_v37 }
 0x42f   :  { %2059 = vmatpush1.bf16.msra.mxu0 %v2487_v10  ;;  %2091 = vmatpush1.bf16.msra.mxu1 %v2490_v14 }
 0x430   :  { %2061 = vmatprep.subr.bf16.mxu0 %v2494_v18  ;;  %2093 = vmatprep.subr.bf16.mxu1 %v2496_v19 }
 0x431   :  { %1127 = vmatprep.mubr.f32.mxu0 %v2418_v0  ;;  %1198 = vmatprep.mubr.f32.mxu1 %v2418_v0 }
 0x433   :  { %2063 = vmatpush1.bf16.msra.mxu0 %v2499_v23  ;;  %2095 = vmatpush1.bf16.msra.mxu1 %v2503_v27 }
 0x434   :  { %2065 = vmatprep.subr.bf16.mxu0 %v2505_v28  ;;  %2097 = vmatprep.subr.bf16.mxu1 %v2507_v32 }
 0x437   :  { %2067 = vmatpush1.bf16.msra.mxu0 %v2510_v36  ;;  %2099 = vmatpush1.bf16.msra.mxu1 %v2514_v40 }
 0x438   :  { %2069 = vmatprep.subr.bf16.mxu0 %v2516_v41  ;;  %2101 = vmatprep.subr.bf16.mxu1 %v2519_v45 }
 0x43b   :  { %2071 = vmatpush1.bf16.msra.mxu0 %v2522_v52  ;;  %2103 = vmatpush1.bf16.msra.mxu1 %v2526_v53 }
 0x43c   :  { %2073 = vmatprep.subr.bf16.mxu0 %v2528_v54  ;;  %2105 = vmatprep.subr.bf16.mxu1 %v2531_v58 }
 0x43f   :  { %2075 = vmatpush1.bf16.msra.mxu0 %v2534_v1  ;;  %2107 = vmatpush1.bf16.msra.mxu1 %v2538_v2 }
 0x440   :  { %2077 = vmatprep.subr.bf16.mxu0 %v2540_v3  ;;  %2109 = vmatprep.subr.bf16.mxu1 %v2543_v8 }
 0x443   :  { %2079 = vmatpush1.bf16.msra.mxu0 %v2546_v17  ;;  %2111 = vmatpush1.bf16.msra.mxu1 %v2550_v21 }
 0x444   :  { %2081 = vmatprep.subr.bf16.mxu0 %v2552_v22  ;;  %2113 = vmatprep.subr.bf16.mxu1 %v2558_v29 }
 0x447   :  { %2083 = vmatpush1.bf16.msra.mxu0 %v2564_v38  ;;  %2115 = vmatpush1.bf16.msra.mxu1 %v2568_v39 }
 0x448   :  { %2085 = vmatprep.subr.bf16.mxu0 %v2570_v42  ;;  %2117 = vmatprep.subr.bf16.mxu1 %v2573_v46 }
 0x44b   :  { %2087 = vmatpush1.bf16.msra.mxu0 %v2579_v50  ;;  %2119 = vmatpush1.bf16.msra.mxu1 %v2583_v51 }
 0x44c   :  { %2121 = vmatprep.subr.bf16.mxu0 %v2483_v5  ;;  %2153 = vmatprep.subr.bf16.mxu1 %v2485_v9 }
 0x501   :  { %v951_v49 = vpop.f32.mrb[8].mxu0  ;;  %v1022_v56 = vpop.f32.mrb[8].mxu1 }
 0x502   :  { %v1027_v60 = vadd.f32 %v951_v49, %v881_v48  ;;  %v953_v61 = vpop.f32.mrb[9].mxu0  ;;  %v1024_v13 = vpop.f32.mrb[9].mxu1  ;;  %v1029_v7 = vadd.f32 %v1022_v56, %v883_v16 }
 0x503   :  { %v1028_v25 = vadd.f32 %v953_v61, %v882_v59  ;;  %v1030_v31 = vadd.f32 %v1024_v13, %v884_v6 }
 0x504   :  { %v1031_v62 = vmul.f32 0.5, %v1027_v60 }
 0x505   :  { %v1035_v57 = vmul.f32 0.5, %v1028_v25  ;;  %v1040_v35 = vmul.f32 0.5, %v1030_v31 }
 0x506   :  { %2324 = vtanh.f32 %v1031_v62 }
 0x507   :  { %2326 = vtanh.f32 %v1035_v57 }
 0x508   :  { %2328 = vtanh.f32 %v1029_v7 }
 0x509   :  { %2330 = vtanh.f32 %v1040_v35 }
 0x510   :  { %v2325_v34 = vpop.eup %2324 }
 0x511   :  { %v2327_v37 = vpop.eup %2326  ;;  %v1033_v43 = vmul.f32 0.5, %v2325_v34 }
 0x512   :  { %v1037_v33 = vmul.f32 0.5, %v2327_v37  ;;  %v2329_v49 = vpop.eup %2328 }
 0x513   :  { %v1034_v48 = vadd.f32 0.5, %v1033_v43  ;;  %v2331_v56 = vpop.eup %2330 }
 0x514   :  { %v1038_v59 = vadd.f32 0.5, %v1037_v33  ;;  %v1042_v61 = vmul.f32 0.5, %v2331_v56 }
 0x515   :  { %v1045_v44 = vmul.f32 %v2329_v49, %v1034_v48 }
 0x516   :  { %v1044_v55 = vmul.f32 %v1038_v59, %v2809_v11  ;;  %v1043_v25 = vadd.f32 0.5, %v1042_v61  ;;  %v1053_v11 = vpop.permute.xlu1 %1052 }
 0x517   :  { %v1055_v16 = vmul.f32 %v1053_v11, %v2632_v63  ;;  %v1056_v26 = vmul.f32 %v1053_v11, %v2634_v4  ;;  %v1057_v7 = vmul.f32 %v1053_v11, %v2639_v12  ;;  %v1058_v48 = vmul.f32 %v1053_v11, %v2647_v24 }
 0x518   :  { %v2855_v60 = vadd.f32 %v1045_v44, %v1044_v55 }
 0x519   :  { %v1059_v57 = vadd.f32 %v1055_v16, %v2642_v15  ;;  %v1060_v35 = vadd.f32 %v1056_v26, %v2645_v20  ;;  %v1062_v44 = vadd.f32 %v1058_v48, %v2656_v47 }
 0x51a   :  { %2332 = vtanh.f32 %v2855_v60 }
 0x524   :  { %v2333_v13 = vpop.eup %2332 }
 0x525   :  { %v1048_v62 = vmul.f32 %v2333_v13, %v1043_v25 }
 0x527   :  { %1128 = vmatmul.mubr.f32.vlgmr.msra.gmra.mrb[10].mxu0 %v1048_v62  ;;  %1199 = vmatmul.mubr.f32.vlgmr.msra.gmra.mrb[10].mxu1 %v1048_v62 }
 0x528   :  { %2123 = vmatpush1.bf16.msra.mxu0 %v2487_v10  ;;  %2155 = vmatpush1.bf16.msra.mxu1 %v2490_v14 }
 0x529   :  { %2125 = vmatprep.subr.bf16.mxu0 %v2494_v18  ;;  %2157 = vmatprep.subr.bf16.mxu1 %v2496_v19 }
 0x52a   :  { %1305 = vmatprep.mubr.f32.mxu0 %v2418_v0  ;;  %1376 = vmatprep.mubr.f32.mxu1 %v2418_v0 }
 0x52c   :  { %2127 = vmatpush1.bf16.msra.mxu0 %v2499_v23  ;;  %2159 = vmatpush1.bf16.msra.mxu1 %v2503_v27 }
 0x52d   :  { %2129 = vmatprep.subr.bf16.mxu0 %v2505_v28  ;;  %2161 = vmatprep.subr.bf16.mxu1 %v2507_v32 }
 0x530   :  { %2131 = vmatpush1.bf16.msra.mxu0 %v2510_v36  ;;  %2163 = vmatpush1.bf16.msra.mxu1 %v2514_v40 }
 0x531   :  { %2133 = vmatprep.subr.bf16.mxu0 %v2516_v41  ;;  %2165 = vmatprep.subr.bf16.mxu1 %v2519_v45 }
 0x534   :  { %2135 = vmatpush1.bf16.msra.mxu0 %v2522_v52  ;;  %2167 = vmatpush1.bf16.msra.mxu1 %v2526_v53 }
 0x535   :  { %2137 = vmatprep.subr.bf16.mxu0 %v2528_v54  ;;  %2169 = vmatprep.subr.bf16.mxu1 %v2531_v58 }
 0x538   :  { %2139 = vmatpush1.bf16.msra.mxu0 %v2534_v1  ;;  %2171 = vmatpush1.bf16.msra.mxu1 %v2538_v2 }
 0x539   :  { %2141 = vmatprep.subr.bf16.mxu0 %v2540_v3  ;;  %2173 = vmatprep.subr.bf16.mxu1 %v2543_v8 }
 0x53c   :  { %2143 = vmatpush1.bf16.msra.mxu0 %v2546_v17  ;;  %2175 = vmatpush1.bf16.msra.mxu1 %v2550_v21 }
 0x53d   :  { %2145 = vmatprep.subr.bf16.mxu0 %v2552_v22  ;;  %2177 = vmatprep.subr.bf16.mxu1 %v2558_v29 }
 0x540   :  { %2147 = vmatpush1.bf16.msra.mxu0 %v2564_v38  ;;  %2179 = vmatpush1.bf16.msra.mxu1 %v2568_v39 }
 0x541   :  { %2149 = vmatprep.subr.bf16.mxu0 %v2570_v42  ;;  %2181 = vmatprep.subr.bf16.mxu1 %v2573_v46 }
 0x544   :  { %2151 = vmatpush1.bf16.msra.mxu0 %v2579_v50  ;;  %2183 = vmatpush1.bf16.msra.mxu1 %v2583_v51 }
 0x545   :  { %2185 = vmatprep.subr.bf16.mxu0 %v2483_v5  ;;  %2217 = vmatprep.subr.bf16.mxu1 %v2485_v9  ;;  %v1061_v9 = vadd.f32 %v1057_v7, %v2651_v30 }
 0x5fa   :  { %v1129_v6 = vpop.f32.mrb[10].mxu0  ;;  %v1200_v31 = vpop.f32.mrb[10].mxu1 }
 0x5fb   :  { %v1205_v34 = vadd.f32 %v1129_v6, %v1059_v57  ;;  %v1131_v37 = vpop.f32.mrb[11].mxu0  ;;  %v1202_v43 = vpop.f32.mrb[11].mxu1  ;;  %v1207_v59 = vadd.f32 %v1200_v31, %v1061_v9 }
 0x5fc   :  { %v1206_v33 = vadd.f32 %v1131_v37, %v1060_v35  ;;  %v1208_v55 = vadd.f32 %v1202_v43, %v1062_v44 }
 0x5fd   :  { %v1209_v5 = vmul.f32 0.5, %v1205_v34 }
 0x5fe   :  { %v1213_v49 = vmul.f32 0.5, %v1206_v33  ;;  %v1218_v56 = vmul.f32 0.5, %v1208_v55  ;;  %v2420_v55 = vmov 0.0|0.0  }
 0x5ff   :  { %2334 = vtanh.f32 %v1209_v5 }
 0x600   :  { %2336 = vtanh.f32 %v1213_v49  ;;  %v1583_v49 = vld [vmem:[#allocation4] sm:$0xff] }
 0x601   :  { %2338 = vtanh.f32 %v1207_v59  ;;  %v1584_v59 = vld [vmem:[#allocation4 + $0x8] sm:$0xff] }
 0x602   :  { %2340 = vtanh.f32 %v1218_v56  ;;  %v2249_v44 = vpack.c.bf16 %v1584_v59, %v1583_v49  ;;  %v1585_v56 = vld [vmem:[#allocation4 + $0x10] sm:$0xff] }
 0x609   :  { %v2335_v61 = vpop.eup %2334 }
 0x60a   :  { %v2337_v25 = vpop.eup %2336  ;;  %v1211_v13 = vmul.f32 0.5, %v2335_v61  ;;  %v1586_v61 = vld [vmem:[#allocation4 + $0x18] sm:$0xff] }
 0x60b   :  { %v1215_v62 = vmul.f32 0.5, %v2337_v25  ;;  %v2339_v26 = vpop.eup %2338  ;;  %v2252_v25 = vpack.c.bf16 %v1586_v61, %v1585_v56 }
 0x60c   :  { %v1212_v16 = vadd.f32 0.5, %v1211_v13  ;;  %v2341_v31 = vpop.eup %2340  ;;  %v1587_v13 = vld [vmem:[#allocation4 + $0x20] sm:$0xff] }
 0x60d   :  { %v1216_v57 = vadd.f32 0.5, %v1215_v62  ;;  %v1220_v35 = vmul.f32 0.5, %v2341_v31  ;;  %v1588_v62 = vld [vmem:[#allocation4 + $0x28] sm:$0xff] }
 0x60e   :  { %v1223_v7 = vmul.f32 %v2339_v26, %v1212_v16  ;;  %v2255_v16 = vpack.c.bf16 %v1588_v62, %v1587_v13  ;;  %v1589_v26 = vld [vmem:[#allocation4 + $0x30] sm:$0xff] }
 0x60f   :  { %v1222_v11 = vmul.f32 %v1216_v57, %v2855_v60  ;;  %v1221_v34 = vadd.f32 0.5, %v1220_v35  ;;  %v1590_v57 = vld [vmem:[#allocation4 + $0x38] sm:$0xff]  ;;  %v1593_v35 = vld [vmem:[#allocation4 + $0x50] sm:$0xff] }
 0x611   :  { %v2901_v6 = vadd.f32 %v1223_v7, %v1222_v11  ;;  %v2258_v7 = vpack.c.bf16 %v1590_v57, %v1589_v26  ;;  %v1591_v11 = vld [vmem:[#allocation4 + $0x40] sm:$0xff] }
 0x613   :  { %2342 = vtanh.f32 %v2901_v6 }
 0x61d   :  { %v2343_v37 = vpop.eup %2342 }
 0x61e   :  { %v1226_v43 = vmul.f32 %v2343_v37, %v1221_v34  ;;  %v1594_v34 = vld [vmem:[#allocation4 + $0x58] sm:$0xff] }
 0x61f   :  { %v2264_v37 = vpack.c.bf16 %v1594_v34, %v1593_v35 }
 0x620   :  { %1306 = vmatmul.mubr.f32.vlgmr.msra.gmra.mrb[12].mxu0 %v1226_v43  ;;  %1377 = vmatmul.mubr.f32.vlgmr.msra.gmra.mrb[12].mxu1 %v1226_v43  ;;  %v1595_v43 = vld [vmem:[#allocation4 + $0x60] sm:$0xff] }
 0x621   :  { %2187 = vmatpush1.bf16.msra.mxu0 %v2487_v10  ;;  %2219 = vmatpush1.bf16.msra.mxu1 %v2490_v14  ;;  %v1231_v10 = vpop.permute.xlu0 %1230 }
 0x622   :  { %2189 = vmatprep.subr.bf16.mxu0 %v2494_v18  ;;  %2221 = vmatprep.subr.bf16.mxu1 %v2496_v19  ;;  %v1233_v14 = vmul.f32 %v1231_v10, %v2632_v63  ;;  %v1234_v18 = vmul.f32 %v1231_v10, %v2634_v4  ;;  %v1235_v19 = vmul.f32 %v1231_v10, %v2639_v12 }
 0x623   :  { %1483 = vmatprep.mubr.f32.mxu0 %v2418_v0  ;;  %1554 = vmatprep.mubr.f32.mxu1 %v2418_v0 }
 0x625   :  { %2191 = vmatpush1.bf16.msra.mxu0 %v2499_v23  ;;  %2223 = vmatpush1.bf16.msra.mxu1 %v2503_v27  ;;  %v1237_v23 = vadd.f32 %v1233_v14, %v2642_v15 }
 0x626   :  { %2193 = vmatprep.subr.bf16.mxu0 %v2505_v28  ;;  %2225 = vmatprep.subr.bf16.mxu1 %v2507_v32  ;;  %v1238_v32 = vadd.f32 %v1234_v18, %v2645_v20  ;;  %v1597_v18 = vld [vmem:[#allocation4 + $0x70] sm:$0xff] }
 0x629   :  { %2195 = vmatpush1.bf16.msra.mxu0 %v2510_v36  ;;  %2227 = vmatpush1.bf16.msra.mxu1 %v2514_v40 }
 0x62a   :  { %2197 = vmatprep.subr.bf16.mxu0 %v2516_v41  ;;  %2229 = vmatprep.subr.bf16.mxu1 %v2519_v45 }
 0x62d   :  { %2199 = vmatpush1.bf16.msra.mxu0 %v2522_v52  ;;  %2231 = vmatpush1.bf16.msra.mxu1 %v2526_v53  ;;  %v1236_v52 = vmul.f32 %v1231_v10, %v2647_v24  ;;  %v1596_v10 = vld [vmem:[#allocation4 + $0x68] sm:$0xff] }
 0x62e   :  { %2201 = vmatprep.subr.bf16.mxu0 %v2528_v54  ;;  %2233 = vmatprep.subr.bf16.mxu1 %v2531_v58  ;;  %v1239_v54 = vadd.f32 %v1235_v19, %v2651_v30  ;;  %v2267_v14 = vpack.c.bf16 %v1596_v10, %v1595_v43  ;;  %v1598_v19 = vld [vmem:[#allocation4 + $0x78] sm:$0xff] }
 0x631   :  { %2203 = vmatpush1.bf16.msra.mxu0 %v2534_v1  ;;  %2235 = vmatpush1.bf16.msra.mxu1 %v2538_v2  ;;  %v1240_v2 = vadd.f32 %v1236_v52, %v2656_v47 }
 0x632   :  { %2205 = vmatprep.subr.bf16.mxu0 %v2540_v3  ;;  %2237 = vmatprep.subr.bf16.mxu1 %v2543_v8 }
 0x635   :  { %2207 = vmatpush1.bf16.msra.mxu0 %v2546_v17  ;;  %2239 = vmatpush1.bf16.msra.mxu1 %v2550_v21 }
 0x636   :  { %2209 = vmatprep.subr.bf16.mxu0 %v2552_v22  ;;  %2241 = vmatprep.subr.bf16.mxu1 %v2558_v29 }
 0x639   :  { %2211 = vmatpush1.bf16.msra.mxu0 %v2564_v38  ;;  %2243 = vmatpush1.bf16.msra.mxu1 %v2568_v39 }
 0x63a   :  { %2213 = vmatprep.subr.bf16.mxu0 %v2570_v42  ;;  %2245 = vmatprep.subr.bf16.mxu1 %v2573_v46 }
 0x63d   :  { %2215 = vmatpush1.bf16.msra.mxu0 %v2579_v50  ;;  %2247 = vmatpush1.bf16.msra.mxu1 %v2583_v51 }
 0x63e   :  { %2248 = vmatprep.subr.bf16.mxu0 %v2420_v55 }
 0x6f3   :  { %v1307_v27 = vpop.f32.mrb[12].mxu0  ;;  %v1378_v28 = vpop.f32.mrb[12].mxu1 }
 0x6f4   :  { %v1383_v36 = vadd.f32 %v1307_v27, %v1237_v23  ;;  %v1309_v40 = vpop.f32.mrb[13].mxu0  ;;  %v1380_v41 = vpop.f32.mrb[13].mxu1  ;;  %v1385_v1 = vadd.f32 %v1378_v28, %v1239_v54  ;;  %v2270_v23 = vpack.c.bf16 %v1598_v19, %v1597_v18 }
 0x6f5   :  { %v1384_v45 = vadd.f32 %v1309_v40, %v1238_v32  ;;  %v1386_v3 = vadd.f32 %v1380_v41, %v1240_v2  ;;  %v1409_v27 = vpop.permute.xlu1 %1408 }
 0x6f6   :  { %v1387_v53 = vmul.f32 0.5, %v1383_v36  ;;  %v1411_v28 = vmul.f32 %v1409_v27, %v2632_v63  ;;  %v1412_v32 = vmul.f32 %v1409_v27, %v2634_v4  ;;  %v1413_v36 = vmul.f32 %v1409_v27, %v2639_v12 }
 0x6f7   :  { %v1391_v58 = vmul.f32 0.5, %v1384_v45  ;;  %v1396_v8 = vmul.f32 0.5, %v1386_v3  ;;  %v1414_v2 = vmul.f32 %v1409_v27, %v2647_v24 }
 0x6f8   :  { %2344 = vtanh.f32 %v1387_v53  ;;  %v1415_v40 = vadd.f32 %v1411_v28, %v2642_v15  ;;  %v1416_v52 = vadd.f32 %v1412_v32, %v2645_v20  ;;  %v1417_v3 = vadd.f32 %v1413_v36, %v2651_v30 }
 0x6f9   :  { %2346 = vtanh.f32 %v1391_v58  ;;  %v1418_v12 = vadd.f32 %v1414_v2, %v2656_v47 }
 0x6fa   :  { %2348 = vtanh.f32 %v1385_v1 }
 0x6fb   :  { %2350 = vtanh.f32 %v1396_v8 }
 0x702   :  { %v2345_v17 = vpop.eup %2344 }
 0x703   :  { %v2347_v21 = vpop.eup %2346  ;;  %v1389_v22 = vmul.f32 0.5, %v2345_v17 }
 0x704   :  { %v1393_v29 = vmul.f32 0.5, %v2347_v21  ;;  %v2349_v39 = vpop.eup %2348 }
 0x705   :  { %v1390_v38 = vadd.f32 0.5, %v1389_v22  ;;  %v2351_v60 = vpop.eup %2350 }
 0x706   :  { %v1394_v42 = vadd.f32 0.5, %v1393_v29  ;;  %v1398_v33 = vmul.f32 0.5, %v2351_v60 }
 0x707   :  { %v1401_v46 = vmul.f32 %v2349_v39, %v1390_v38 }
 0x708   :  { %v1400_v50 = vmul.f32 %v1394_v42, %v2901_v6  ;;  %v1399_v5 = vadd.f32 0.5, %v1398_v33  ;;  %v1592_v6 = vld [vmem:[#allocation4 + $0x48] sm:$0xff] }
 0x709   :  { %v2261_v31 = vpack.c.bf16 %v1592_v6, %v1591_v11 }
 0x70a   :  { %v2945_v51 = vadd.f32 %v1401_v46, %v1400_v50 }
 0x70c   :  { %2352 = vtanh.f32 %v2945_v51 }
 0x716   :  { %v2353_v9 = vpop.eup %2352 }
 0x717   :  { %v1404_v48 = vmul.f32 %v2353_v9, %v1399_v5  ;;  %v1683_v5 = vld [vmem:[%s2969_s5] ss:$0 sm:$0xff] }
 0x719   :  { %1484 = vmatmul.mubr.f32.vlgmr.msra.gmra.mrb[14].mxu0 %v1404_v48  ;;  %1555 = vmatmul.mubr.f32.vlgmr.msra.gmra.mrb[14].mxu1 %v1404_v48 }
 0x71a   :  { %2250 = vmatpush3.bf16.msra.mxu0 %v2249_v44  ;;  %1733 = vmatprep.mubr.msk.f32.mxu0 %vm2421_vm0, %v2418_v0 }
 0x71b   :  { %2251 = vmatprep.subr.bf16.mxu0 %v2420_v55 }
 0x71e   :  { %2253 = vmatpush3.bf16.msra.mxu0 %v2252_v25 }
 0x71f   :  { %2254 = vmatprep.subr.bf16.mxu0 %v2420_v55 }
 0x722   :  { %2256 = vmatpush3.bf16.msra.mxu0 %v2255_v16 }
 0x723   :  { %2257 = vmatprep.subr.bf16.mxu0 %v2420_v55 }
 0x726   :  { %2259 = vmatpush3.bf16.msra.mxu0 %v2258_v7 }
 0x727   :  { %2260 = vmatprep.subr.bf16.mxu0 %v2420_v55 }
 0x72a   :  { %2262 = vmatpush3.bf16.msra.mxu0 %v2261_v31 }
 0x72b   :  { %2263 = vmatprep.subr.bf16.mxu0 %v2420_v55 }
 0x72e   :  { %2265 = vmatpush3.bf16.msra.mxu0 %v2264_v37 }
 0x72f   :  { %2266 = vmatprep.subr.bf16.mxu0 %v2420_v55 }
 0x732   :  { %2268 = vmatpush3.bf16.msra.mxu0 %v2267_v14 }
 0x733   :  { %2269 = vmatprep.subr.bf16.mxu0 %v2420_v55 }
 0x736   :  { %2271 = vmatpush3.bf16.msra.mxu0 %v2270_v23 }
 0x7ec   :  { %v1485_v41 = vpop.f32.mrb[14].mxu0  ;;  %v1556_v45 = vpop.f32.mrb[14].mxu1 }
 0x7ed   :  { %v1561_v53 = vadd.f32 %v1485_v41, %v1415_v40  ;;  %v1487_v54 = vpop.f32.mrb[15].mxu0  ;;  %v1558_v58 = vpop.f32.mrb[15].mxu1  ;;  %v1563_v4 = vadd.f32 %v1556_v45, %v1417_v3 }
 0x7ee   :  { %v1562_v1 = vadd.f32 %v1487_v54, %v1416_v52  ;;  %v1564_v15 = vadd.f32 %v1558_v58, %v1418_v12 }
 0x7ef   :  { %v1565_v0 = vmul.f32 0.5, %v1561_v53 }
 0x7f0   :  { %v1569_v63 = vmul.f32 0.5, %v1562_v1  ;;  %v1574_v8 = vmul.f32 0.5, %v1564_v15 }
 0x7f1   :  { %2354 = vtanh.f32 %v1565_v0 }
 0x7f2   :  { %2356 = vtanh.f32 %v1569_v63 }
 0x7f3   :  { %2358 = vtanh.f32 %v1563_v4 }
 0x7f4   :  { %2360 = vtanh.f32 %v1574_v8 }
 0x7fb   :  { %v2355_v17 = vpop.eup %2354 }
 0x7fc   :  { %v2357_v20 = vpop.eup %2356  ;;  %v1567_v21 = vmul.f32 0.5, %v2355_v17 }
 0x7fd   :  { %v1571_v22 = vmul.f32 0.5, %v2357_v20  ;;  %v2359_v38 = vpop.eup %2358 }
 0x7fe   :  { %v1568_v29 = vadd.f32 0.5, %v1567_v21  ;;  %v2361_v46 = vpop.eup %2360 }
 0x7ff   :  { %v1572_v24 = vadd.f32 0.5, %v1571_v22  ;;  %v1576_v50 = vmul.f32 0.5, %v2361_v46 }
 0x800   :  { %v1579_v39 = vmul.f32 %v2359_v38, %v1568_v29 }
 0x801   :  { %v1578_v30 = vmul.f32 %v1572_v24, %v2945_v51  ;;  %v1577_v60 = vadd.f32 0.5, %v1576_v50 }
 0x803   :  { %v1580_v42 = vadd.f32 %v1579_v39, %v1578_v30 }
 0x805   :  { %2362 = vtanh.f32 %v1580_v42 }
 0x80f   :  { %v2363_v47 = vpop.eup %2362 }
 0x810   :  { %v1582_v33 = vmul.f32 %v2363_v47, %v1577_v60 }
 0x812   :  { %1734 = vmatmul.mubr.f32.vlgmr.msra.gmra.mrb[16].mxu0 %v1582_v33 }
 0x8e5   :  { %v1672_v9 = vpop.f32.mrb[16].mxu0 }
 0x8e6   :  { %v1673_v48 = vadd.f32 %v1683_v5, %v1672_v9  ;;  %v1735_v49 = vpop.f32.mrb[17].mxu0 }
 0x8e8   :  { %1676 = vst [vmem:[%s2970_s6] sm:$0xff] %v1673_v48 }
 0x8e9   :  { %1681 = vsyncpa [#allocation3], 1 }
 0x8ea   :  { %1682 = vsyncpa [#allocation5], 1 }

</bundles_post_ra>
